<compile_context>
chip_gen: v6e
topology: v6e:2x2x1
jax: 0.10.0
libtpu: 0.0.40
codegen_flags: <defaults>
</compile_context>

<pallas_src>
import jax
import jax.numpy as jnp
from jax.experimental import pallas as pl
from jax.experimental.pallas import tpu as pltpu


def _jknet_fused_kernel(a_ref, dinv_ref, x_ref, w1_ref, b1_ref, w2_ref, b2_ref,
                        wo_ref, bo_ref, out_ref):
    """Entire JKNet forward, everything VMEM-resident (single grid point)."""
    a = a_ref[...]                       # (N, N) bf16 raw 0/1 adjacency (exact)
    d = dinv_ref[...]                    # (N, 1) f32  D^{-1/2}

    # ---- GraphConv 1: h1 = relu(Ddst * (A @ (Dsrc * (X @ W1))) + b1) -------------------
    z1 = jnp.dot(x_ref[...], w1_ref[...], preferred_element_type=jnp.float32) * d
    h1 = jnp.dot(a, z1.astype(jnp.bfloat16), preferred_element_type=jnp.float32)
    h1 = jnp.maximum(h1 * d + b1_ref[...], 0.0)
    # TODO(synk): nn.Dropout(p=0.0) is the identity; nonzero-p training dropout would need
    # pltpu.prng_seed/prng_random_bits + masking on h1/h2 here.

    # ---- GraphConv 2 --------------------------------------------------------------------
    z2 = jnp.dot(h1, w2_ref[...], preferred_element_type=jnp.float32) * d
    h2 = jnp.dot(a, z2.astype(jnp.bfloat16), preferred_element_type=jnp.float32)
    h2 = jnp.maximum(h2 * d + b2_ref[...], 0.0)

    # ---- JK 'cat' + copy_u/sum aggregation + output Linear -------------------------------
    # out = (A @ hcat) @ Wout + b  ==  A @ (h1 @ Wout[:H] + h2 @ Wout[H:]) + b
    hid = w2_ref.shape[1]
    zo = (jnp.dot(h1, wo_ref[:hid, :], preferred_element_type=jnp.float32)
          + jnp.dot(h2, wo_ref[hid:, :], preferred_element_type=jnp.float32))
    out_ref[...] = jnp.dot(a, zo.astype(jnp.bfloat16),
                           preferred_element_type=jnp.float32) + bo_ref[...]


def jknet_forward(a_bf16, d_inv_sqrt, x, w1, b1, w2, b2, wo, bo):
    n = a_bf16.shape[0]
    out_dim = wo.shape[1]
    # Fused path assumes the whole working set (dominated by the NxN bf16 adjacency)
    # fits comfortably in VMEM on every generation (v7x has 64 MiB physical).
    assert 2 * n * n <= 8 * 1024 * 1024, "fused path needs the NxN adjacency VMEM-resident"
    assert n % 8 == 0, "node count must be sublane-aligned for the demo"

    return pl.pallas_call(
        _jknet_fused_kernel,
        out_shape=jax.ShapeDtypeStruct((n, out_dim), jnp.float32),
        compiler_params=pltpu.CompilerParams(
            vmem_limit_bytes=64 * 1024 * 1024,
        ),
    )(a_bf16, d_inv_sqrt, x, w1, b1, w2, b2, wo, bo)


def _reference(a, d_inv_sqrt, x, w1, b1, w2, b2, wo, bo):
    a_hat = d_inv_sqrt * a * d_inv_sqrt.T
    h1 = jax.nn.relu(a_hat @ (x @ w1) + b1)
    h2 = jax.nn.relu(a_hat @ (h1 @ w2) + b2)
    hcat = jnp.concatenate([h1, h2], axis=1)
    return (a @ hcat) @ wo + bo


if __name__ == "__main__":
    N, IN_DIM, HID, OUT_DIM = 256, 32, 32, 16  # num_layers=1 -> 2 GraphConv layers

    key = jax.random.PRNGKey(0)
    k_adj, k_x, k_w1, k_w2, k_wo, k_bo = jax.random.split(key, 6)

    # Deterministic synthetic undirected graph with self-loops (so deg >= 1, and
    # src/dst degree norms coincide as DGL's norm='both' assumes for this symmetric demo).
    rand = jax.random.uniform(k_adj, (N, N))
    adj = (rand + rand.T) * 0.5 > 0.9
    adj = jnp.logical_or(adj, jnp.eye(N, dtype=bool))
    a = adj.astype(jnp.float32)                         # raw 0/1 adjacency (copy_u/sum)
    a_bf16 = a.astype(jnp.bfloat16)                     # 0/1 entries exact in bf16

    deg = jnp.clip(a.sum(axis=1, keepdims=True), 1.0, None)
    d_inv_sqrt = (deg ** -0.5).astype(jnp.float32)      # [N, 1]

    x = jax.random.normal(k_x, (N, IN_DIM), dtype=jnp.float32)

    # Deterministic parameter init (shapes per module __init__).
    w1 = jax.random.normal(k_w1, (IN_DIM, HID), dtype=jnp.float32) * 0.1
    b1 = jnp.zeros((1, HID), dtype=jnp.float32)         # DGL GraphConv bias init = zeros
    w2 = jax.random.normal(k_w2, (HID, HID), dtype=jnp.float32) * 0.1
    b2 = jnp.zeros((1, HID), dtype=jnp.float32)
    wo = jax.random.normal(k_wo, (2 * HID, OUT_DIM), dtype=jnp.float32) * 0.1  # Linear W^T
    bo = jax.random.normal(k_bo, (1, OUT_DIM), dtype=jnp.float32) * 0.1

    fwd = jax.jit(jknet_forward)
    out = jax.block_until_ready(fwd(a_bf16, d_inv_sqrt, x, w1, b1, w2, b2, wo, bo))

    ref = _reference(a, d_inv_sqrt, x, w1, b1, w2, b2, wo, bo)
    assert out.shape == (N, OUT_DIM)
    # Tolerance loosened vs a pure-f32 path because the NxN MXU operands are bf16.
    assert jnp.allclose(out, ref, atol=2e-2, rtol=2e-2), float(jnp.max(jnp.abs(out - ref)))

    print("KERNEL_OK")
</pallas_src>

<mosaic_0001>
module attributes {stable_mosaic.version = 11 : i64} {
  func.func @_jknet_fused_kernel(%arg0: memref<256x256xbf16, #tpu.memory_space<vmem>>, %arg1: memref<256x1xf32, #tpu.memory_space<vmem>>, %arg2: memref<256x32xf32, #tpu.memory_space<vmem>>, %arg3: memref<32x32xf32, #tpu.memory_space<vmem>>, %arg4: memref<1x32xf32, #tpu.memory_space<vmem>>, %arg5: memref<32x32xf32, #tpu.memory_space<vmem>>, %arg6: memref<1x32xf32, #tpu.memory_space<vmem>>, %arg7: memref<64x16xf32, #tpu.memory_space<vmem>>, %arg8: memref<1x16xf32, #tpu.memory_space<vmem>>, %arg9: memref<256x16xf32, #tpu.memory_space<vmem>>) attributes {dimension_semantics = [], scalar_prefetch = 0 : i64, scratch_operands = 0 : i64, tpu.core_type = #tpu.core_type<tc>} {
    %c0 = arith.constant 0 : index
    %c0_0 = arith.constant 0 : index
    %0 = vector.load %arg0[%c0, %c0_0] : memref<256x256xbf16, #tpu.memory_space<vmem>>, vector<256x256xbf16>
    %c0_1 = arith.constant 0 : index
    %c0_2 = arith.constant 0 : index
    %1 = vector.load %arg1[%c0_1, %c0_2] : memref<256x1xf32, #tpu.memory_space<vmem>>, vector<256x1xf32>
    %c0_3 = arith.constant 0 : index
    %c0_4 = arith.constant 0 : index
    %2 = vector.load %arg2[%c0_3, %c0_4] : memref<256x32xf32, #tpu.memory_space<vmem>>, vector<256x32xf32>
    %c0_5 = arith.constant 0 : index
    %c0_6 = arith.constant 0 : index
    %3 = vector.load %arg3[%c0_5, %c0_6] : memref<32x32xf32, #tpu.memory_space<vmem>>, vector<32x32xf32>
    %cst = arith.constant dense<0.000000e+00> : vector<256x32xf32>
    %4 = tpu.matmul %2, %3, %cst {dimension_numbers = #tpu.dot_dimension_numbers<[1], [0], [0], [1], [0, 0, 1, 1], [], []>} : vector<256x32xf32>, vector<32x32xf32>, vector<256x32xf32> -> vector<256x32xf32>
    %5 = vector.broadcast %1 : vector<256x1xf32> to vector<256x32xf32>
    %6 = arith.mulf %4, %5 : vector<256x32xf32>
    %7 = arith.truncf %6 : vector<256x32xf32> to vector<256x32xbf16>
    %cst_7 = arith.constant dense<0.000000e+00> : vector<256x32xf32>
    %8 = tpu.matmul %0, %7, %cst_7 {dimension_numbers = #tpu.dot_dimension_numbers<[1], [0], [0], [1], [0, 0, 1, 1], [], []>} : vector<256x256xbf16>, vector<256x32xbf16>, vector<256x32xf32> -> vector<256x32xf32>
    %9 = vector.broadcast %1 : vector<256x1xf32> to vector<256x32xf32>
    %10 = arith.mulf %8, %9 : vector<256x32xf32>
    %c0_8 = arith.constant 0 : index
    %c0_9 = arith.constant 0 : index
    %11 = vector.load %arg4[%c0_8, %c0_9] : memref<1x32xf32, #tpu.memory_space<vmem>>, vector<1x32xf32>
    %12 = vector.broadcast %11 : vector<1x32xf32> to vector<256x32xf32>
    %13 = arith.addf %10, %12 : vector<256x32xf32>
    %cst_10 = arith.constant 0.000000e+00 : f32
    %14 = vector.broadcast %cst_10 : f32 to vector<256x32xf32>
    %15 = arith.maximumf %13, %14 : vector<256x32xf32>
    %c0_11 = arith.constant 0 : index
    %c0_12 = arith.constant 0 : index
    %16 = vector.load %arg5[%c0_11, %c0_12] : memref<32x32xf32, #tpu.memory_space<vmem>>, vector<32x32xf32>
    %cst_13 = arith.constant dense<0.000000e+00> : vector<256x32xf32>
    %17 = tpu.matmul %15, %16, %cst_13 {dimension_numbers = #tpu.dot_dimension_numbers<[1], [0], [0], [1], [0, 0, 1, 1], [], []>} : vector<256x32xf32>, vector<32x32xf32>, vector<256x32xf32> -> vector<256x32xf32>
    %18 = vector.broadcast %1 : vector<256x1xf32> to vector<256x32xf32>
    %19 = arith.mulf %17, %18 : vector<256x32xf32>
    %20 = arith.truncf %19 : vector<256x32xf32> to vector<256x32xbf16>
    %cst_14 = arith.constant dense<0.000000e+00> : vector<256x32xf32>
    %21 = tpu.matmul %0, %20, %cst_14 {dimension_numbers = #tpu.dot_dimension_numbers<[1], [0], [0], [1], [0, 0, 1, 1], [], []>} : vector<256x256xbf16>, vector<256x32xbf16>, vector<256x32xf32> -> vector<256x32xf32>
    %22 = vector.broadcast %1 : vector<256x1xf32> to vector<256x32xf32>
    %23 = arith.mulf %21, %22 : vector<256x32xf32>
    %c0_15 = arith.constant 0 : index
    %c0_16 = arith.constant 0 : index
    %24 = vector.load %arg6[%c0_15, %c0_16] : memref<1x32xf32, #tpu.memory_space<vmem>>, vector<1x32xf32>
    %25 = vector.broadcast %24 : vector<1x32xf32> to vector<256x32xf32>
    %26 = arith.addf %23, %25 : vector<256x32xf32>
    %cst_17 = arith.constant 0.000000e+00 : f32
    %27 = vector.broadcast %cst_17 : f32 to vector<256x32xf32>
    %28 = arith.maximumf %26, %27 : vector<256x32xf32>
    %c0_18 = arith.constant 0 : index
    %c0_19 = arith.constant 0 : index
    %29 = vector.load %arg7[%c0_18, %c0_19] : memref<64x16xf32, #tpu.memory_space<vmem>>, vector<32x16xf32>
    %cst_20 = arith.constant dense<0.000000e+00> : vector<256x16xf32>
    %30 = tpu.matmul %15, %29, %cst_20 {dimension_numbers = #tpu.dot_dimension_numbers<[1], [0], [0], [1], [0, 0, 1, 1], [], []>} : vector<256x32xf32>, vector<32x16xf32>, vector<256x16xf32> -> vector<256x16xf32>
    %c32 = arith.constant 32 : index
    %c0_21 = arith.constant 0 : index
    %31 = vector.load %arg7[%c32, %c0_21] : memref<64x16xf32, #tpu.memory_space<vmem>>, vector<32x16xf32>
    %cst_22 = arith.constant dense<0.000000e+00> : vector<256x16xf32>
    %32 = tpu.matmul %28, %31, %cst_22 {dimension_numbers = #tpu.dot_dimension_numbers<[1], [0], [0], [1], [0, 0, 1, 1], [], []>} : vector<256x32xf32>, vector<32x16xf32>, vector<256x16xf32> -> vector<256x16xf32>
    %33 = arith.addf %30, %32 : vector<256x16xf32>
    %34 = arith.truncf %33 : vector<256x16xf32> to vector<256x16xbf16>
    %cst_23 = arith.constant dense<0.000000e+00> : vector<256x16xf32>
    %35 = tpu.matmul %0, %34, %cst_23 {dimension_numbers = #tpu.dot_dimension_numbers<[1], [0], [0], [1], [0, 0, 1, 1], [], []>} : vector<256x256xbf16>, vector<256x16xbf16>, vector<256x16xf32> -> vector<256x16xf32>
    %c0_24 = arith.constant 0 : index
    %c0_25 = arith.constant 0 : index
    %36 = vector.load %arg8[%c0_24, %c0_25] : memref<1x16xf32, #tpu.memory_space<vmem>>, vector<1x16xf32>
    %37 = vector.broadcast %36 : vector<1x16xf32> to vector<256x16xf32>
    %38 = arith.addf %35, %37 : vector<256x16xf32>
    %c0_26 = arith.constant 0 : index
    %c0_27 = arith.constant 0 : index
    %39 = vector.load %arg9[%c0_26, %c0_27] : memref<256x16xf32, #tpu.memory_space<vmem>>, vector<256x16xf32>
    tpu.vector_store %arg9[%c0_26, %c0_27], %38 {strides = array<i32>} : memref<256x16xf32, #tpu.memory_space<vmem>>, vector<256x16xf32>,
    return
  }
}

</mosaic_0001>

<bundles_post_ra>
// kernel: jknet_forward.1
= control target key start
LH: loop header
LB: loop body
LE: loop exit
PB: predicated region body
PF: predicated region fallthrough
CT: control target
= control target key end

     0   :  { %vm133_vm0 = vcmask 261120   ;;  %v3449_v2 = vmov 0   ;;  %vm2462_vm1 = vcmask 130048   ;;  %s5005_s3 = inlined_call_operand.vmem [shape: f32[32,32], index: 3, kind: input, shape index: {}]   ;;  %s5006_s2 = inlined_call_operand.vmem [shape: f32[256,32], index: 2, kind: input, shape index: {}]   ;;  %s5007_s1 = inlined_call_operand.vmem [shape: f32[256,1], index: 1, kind: input, shape index: {}]   ;;  %s5008_s0 = inlined_call_operand.vmem [shape: bf16[256,256], index: 0, kind: input, shape index: {}]   ;;  %s5009_s5 = inlined_call_operand.vmem [shape: f32[32,32], index: 5, kind: input, shape index: {}]   ;;  %s5010_s4 = inlined_call_operand.vmem [shape: f32[1,32], index: 4, kind: input, shape index: {}]   ;;  %s5011_s7 = inlined_call_operand.vmem [shape: f32[64,16], index: 7, kind: input, shape index: {}]   ;;  %s5012_s6 = inlined_call_operand.vmem [shape: f32[1,32], index: 6, kind: input, shape index: {}]   ;;  %s5013_s8 = inlined_call_operand.vmem [shape: f32[1,16], index: 8, kind: input, shape index: {}]   ;;  %s5014_s9 = inlined_call_operand.vmem [shape: f32[256,16], index: 9, kind: output, shape index: {}]  }
   0x1   :  { %v132_v0 = vld [vmem:[%s5005_s3 + $0x18] sm:$0xff]  ;;  %v131_v1 = vld [vmem:[%s5005_s3 + $0x10] sm:$0xff]  ;;  %3368 = vset.pattern.permute.xlu1 %v3449_v2  ;;  %3367 = vset.pattern.permute.xlu0 %v3449_v2  ;;  %v97_v3 = vld [vmem:[%s5006_s2] sm:$0xff] }
   0x2   :  { %3142 = vmatprep.subr.mxu1 %v132_v0  ;;  %v130_v4 = vld [vmem:[%s5005_s3 + $0x8] sm:$0xff]  ;;  %3150 = vmatprep.mubr.msk.f32.mxu1 %vm133_vm0, %v97_v3  ;;  %v79_v5 = vld [vmem:[%s5007_s1 + $0x70] sm:$0xff]  ;;  %v129_v6 = vld [vmem:[%s5005_s3] sm:$0xff] }
   0x3   :  { %3143 = vmatpush3.msra.mxu1 %v132_v0  ;;  %527 = vperm.xlu1 %3368, %v79_v5   ;;  %v95_v7 = vld [vmem:[%s5007_s1 + $0xf0] sm:$0xff]  ;;  %v80_v8 = vld [vmem:[%s5007_s1 + $0x78] sm:$0xff]  ;;  %v98_v9 = vld [vmem:[%s5006_s2 + $0x8] sm:$0xff] }
   0x4   :  { %3144 = vmatprep.subr.mxu1 %v131_v1  ;;  %607 = vperm.xlu0 %3367, %v95_v7   ;;  %v96_v10 = vld [vmem:[%s5007_s1 + $0xf8] sm:$0xff]  ;;  %v99_v11 = vld [vmem:[%s5006_s2 + $0x10] sm:$0xff]  ;;  %v94_v12 = vld [vmem:[%s5007_s1 + $0xe8] sm:$0xff] }
   0x5   :  { %3145 = vmatpush3.msra.mxu1 %v131_v1  ;;  %v100_v13 = vld [vmem:[%s5006_s2 + $0x18] sm:$0xff]  ;;  %v93_v14 = vld [vmem:[%s5007_s1 + $0xe0] sm:$0xff]  ;;  %v78_v16 = vld [vmem:[%s5007_s1 + $0x68] sm:$0xff] }
   0x6   :  { %3146 = vmatprep.subr.mxu1 %v130_v4  ;;  %v101_v15 = vld [vmem:[%s5006_s2 + $0x20] sm:$0xff]  ;;  %v102_v17 = vld [vmem:[%s5006_s2 + $0x28] sm:$0xff]  ;;  %v103_v19 = vld [vmem:[%s5006_s2 + $0x30] sm:$0xff] }
   0x7   :  { %3147 = vmatpush3.msra.mxu1 %v130_v4  ;;  %532 = vperm.xlu1 %3368, %v80_v8   ;;  %v77_v18 = vld [vmem:[%s5007_s1 + $0x60] sm:$0xff]  ;;  %v92_v20 = vld [vmem:[%s5007_s1 + $0xd8] sm:$0xff]  ;;  %v91_v22 = vld [vmem:[%s5007_s1 + $0xd0] sm:$0xff] }
   0x8   :  { %3148 = vmatprep.subr.mxu1 %v129_v6  ;;  %612 = vperm.xlu0 %3367, %v96_v10   ;;  %v104_v21 = vld [vmem:[%s5006_s2 + $0x38] sm:$0xff]  ;;  %v105_v23 = vld [vmem:[%s5006_s2 + $0x40] sm:$0xff]  ;;  %v106_v25 = vld [vmem:[%s5006_s2 + $0x48] sm:$0xff] }
   0x9   :  { %3149 = vmatpush3.msra.mxu1 %v129_v6  ;;  %v76_v24 = vld [vmem:[%s5007_s1 + $0x58] sm:$0xff]  ;;  %v75_v26 = vld [vmem:[%s5007_s1 + $0x50] sm:$0xff]  ;;  %v90_v28 = vld [vmem:[%s5007_s1 + $0xc8] sm:$0xff] }
   0xa   :  { %3151 = vmatmul.mubr.msk.f32.vlgmr.msra.gmra.mxu1 %vm133_vm0, %v98_v9  ;;  %v107_v27 = vld [vmem:[%s5006_s2 + $0x50] sm:$0xff]  ;;  %v108_v29 = vld [vmem:[%s5006_s2 + $0x58] sm:$0xff]  ;;  %v89_v30 = vld [vmem:[%s5007_s1 + $0xc0] sm:$0xff] }
   0xb   :  { %3153 = vmatprep.mubr.msk.f32.mxu1 %vm133_vm0, %v99_v11  ;;  %602 = vperm.xlu1 %3368, %v94_v12   ;;  %v109_v31 = vld [vmem:[%s5006_s2 + $0x60] sm:$0xff]  ;;  %v74_v32 = vld [vmem:[%s5007_s1 + $0x48] sm:$0xff]  ;;  %v111_v35 = vld [vmem:[%s5006_s2 + $0x70] sm:$0xff] }
   0xc   :  { %597 = vperm.xlu0 %3367, %v93_v14   ;;  %v110_v33 = vld [vmem:[%s5006_s2 + $0x68] sm:$0xff]  ;;  %v73_v34 = vld [vmem:[%s5007_s1 + $0x40] sm:$0xff]  ;;  %v88_v36 = vld [vmem:[%s5007_s1 + $0xb8] sm:$0xff] }
   0xd   :  { %v112_v37 = vld [vmem:[%s5006_s2 + $0x78] sm:$0xff]  ;;  %v87_v38 = vld [vmem:[%s5007_s1 + $0xb0] sm:$0xff]  ;;  %v113_v39 = vld [vmem:[%s5006_s2 + $0x80] sm:$0xff] }
   0xe   :  { %3154 = vmatmul.mubr.msk.f32.gmra.mxu1 %vm133_vm0, %v100_v13  ;;  %v72_v40 = vld [vmem:[%s5007_s1 + $0x38] sm:$0xff]  ;;  %v114_v41 = vld [vmem:[%s5006_s2 + $0x88] sm:$0xff]  ;;  %v71_v42 = vld [vmem:[%s5007_s1 + $0x30] sm:$0xff] }
   0xf   :  { %3156 = vmatprep.mubr.msk.f32.mxu1 %vm133_vm0, %v101_v15  ;;  %522 = vperm.xlu1 %3368, %v78_v16   ;;  %v115_v43 = vld [vmem:[%s5006_s2 + $0x90] sm:$0xff]  ;;  %v86_v44 = vld [vmem:[%s5007_s1 + $0xa8] sm:$0xff]  ;;  %v116_v45 = vld [vmem:[%s5006_s2 + $0x98] sm:$0xff] }
  0x10   :  { %517 = vperm.xlu0 %3367, %v77_v18   ;;  %v85_v46 = vld [vmem:[%s5007_s1 + $0xa0] sm:$0xff]  ;;  %v70_v48 = vld [vmem:[%s5007_s1 + $0x28] sm:$0xff]  ;;  %v119_v51 = vld [vmem:[%s5006_s2 + $0xb0] sm:$0xff] }
  0x11   :  { %v117_v47 = vld [vmem:[%s5006_s2 + $0xa0] sm:$0xff]  ;;  %v118_v49 = vld [vmem:[%s5006_s2 + $0xa8] sm:$0xff]  ;;  %v84_v52 = vld [vmem:[%s5007_s1 + $0x98] sm:$0xff] }
  0x12   :  { %3157 = vmatmul.mubr.msk.f32.gmra.mxu1 %vm133_vm0, %v102_v17  ;;  %v69_v50 = vld [vmem:[%s5007_s1 + $0x20] sm:$0xff]  ;;  %v120_v53 = vld [vmem:[%s5006_s2 + $0xb8] sm:$0xff]  ;;  %v83_v54 = vld [vmem:[%s5007_s1 + $0x90] sm:$0xff] }
  0x13   :  { %3159 = vmatprep.mubr.msk.f32.mxu1 %vm133_vm0, %v103_v19  ;;  %592 = vperm.xlu1 %3368, %v92_v20   ;;  %v121_v55 = vld [vmem:[%s5006_s2 + $0xc0] sm:$0xff]  ;;  %v68_v56 = vld [vmem:[%s5007_s1 + $0x18] sm:$0xff]  ;;  %v122_v57 = vld [vmem:[%s5006_s2 + $0xc8] sm:$0xff] }
  0x14   :  { %587 = vperm.xlu0 %3367, %v91_v22   ;;  %v67_v58 = vld [vmem:[%s5007_s1 + $0x10] sm:$0xff]  ;;  %v82_v60 = vld [vmem:[%s5007_s1 + $0x88] sm:$0xff]  ;;  %v124_v61 = vld [vmem:[%s5006_s2 + $0xd8] sm:$0xff] }
  0x15   :  { %v123_v59 = vld [vmem:[%s5006_s2 + $0xd0] sm:$0xff]  ;;  %v81_v62 = vld [vmem:[%s5007_s1 + $0x80] sm:$0xff]  ;;  %v66_v0 = vld [vmem:[%s5007_s1 + $0x8] sm:$0xff] }
  0x16   :  { %3160 = vmatmul.mubr.msk.f32.gmra.mxu1 %vm133_vm0, %v104_v21  ;;  %v125_v63 = vld [vmem:[%s5006_s2 + $0xe0] sm:$0xff]  ;;  %v126_v1 = vld [vmem:[%s5006_s2 + $0xe8] sm:$0xff]  ;;  %v127_v3 = vld [vmem:[%s5006_s2 + $0xf0] sm:$0xff] }
  0x17   :  { %3162 = vmatprep.mubr.msk.f32.mxu1 %vm133_vm0, %v105_v23  ;;  %512 = vperm.xlu1 %3368, %v76_v24   ;;  %v65_v2 = vld [vmem:[%s5007_s1] sm:$0xff]  ;;  %v128_v4 = vld [vmem:[%s5006_s2 + $0xf8] sm:$0xff] }
  0x18   :  { %507 = vperm.xlu0 %3367, %v75_v26   ;;  %v3739_v5 = vld [vmem:[%s5008_s0 + $0x4] ss:$8 sps:$4 sm:$0xff]  }
  0x19   :  { %5129 = vst [vmem:[#allocation2_spill] sm:$0xff] %v3739_v5 }
  0x1a   :  { %3163 = vmatmul.mubr.msk.f32.gmra.mxu1 %vm133_vm0, %v106_v25 }
  0x1b   :  { %3165 = vmatprep.mubr.msk.f32.mxu1 %vm133_vm0, %v107_v27  ;;  %582 = vperm.xlu1 %3368, %v90_v28  }
  0x1c   :  { %577 = vperm.xlu0 %3367, %v89_v30  }
  0x1e   :  { %3166 = vmatmul.mubr.msk.f32.gmra.mxu1 %vm133_vm0, %v108_v29 }
  0x1f   :  { %3168 = vmatprep.mubr.msk.f32.mxu1 %vm133_vm0, %v109_v31  ;;  %502 = vperm.xlu1 %3368, %v74_v32  }
  0x20   :  { %497 = vperm.xlu0 %3367, %v73_v34  }
  0x22   :  { %3169 = vmatmul.mubr.msk.f32.gmra.mxu1 %vm133_vm0, %v110_v33 }
  0x23   :  { %3171 = vmatprep.mubr.msk.f32.mxu1 %vm133_vm0, %v111_v35  ;;  %572 = vperm.xlu1 %3368, %v88_v36  }
  0x24   :  { %567 = vperm.xlu0 %3367, %v87_v38  }
  0x26   :  { %3172 = vmatmul.mubr.msk.f32.gmra.mxu1 %vm133_vm0, %v112_v37 }
  0x27   :  { %3174 = vmatprep.mubr.msk.f32.mxu1 %vm133_vm0, %v113_v39  ;;  %492 = vperm.xlu1 %3368, %v72_v40  }
  0x28   :  { %487 = vperm.xlu0 %3367, %v71_v42  }
  0x2a   :  { %3175 = vmatmul.mubr.msk.f32.gmra.mxu1 %vm133_vm0, %v114_v41 }
  0x2b   :  { %3177 = vmatprep.mubr.msk.f32.mxu1 %vm133_vm0, %v115_v43  ;;  %562 = vperm.xlu1 %3368, %v86_v44  }
  0x2c   :  { %557 = vperm.xlu0 %3367, %v85_v46  }
  0x2e   :  { %3178 = vmatmul.mubr.msk.f32.gmra.mxu1 %vm133_vm0, %v116_v45 }
  0x2f   :  { %3180 = vmatprep.mubr.msk.f32.mxu1 %vm133_vm0, %v117_v47  ;;  %482 = vperm.xlu1 %3368, %v70_v48  }
  0x30   :  { %477 = vperm.xlu0 %3367, %v69_v50  }
  0x32   :  { %3181 = vmatmul.mubr.msk.f32.gmra.mxu1 %vm133_vm0, %v118_v49 }
  0x33   :  { %3183 = vmatprep.mubr.msk.f32.mxu1 %vm133_vm0, %v119_v51  ;;  %552 = vperm.xlu1 %3368, %v84_v52  }
  0x34   :  { %547 = vperm.xlu0 %3367, %v83_v54  }
  0x36   :  { %3184 = vmatmul.mubr.msk.f32.gmra.mxu1 %vm133_vm0, %v120_v53 }
  0x37   :  { %3186 = vmatprep.mubr.msk.f32.mxu1 %vm133_vm0, %v121_v55  ;;  %472 = vperm.xlu1 %3368, %v68_v56  }
  0x38   :  { %467 = vperm.xlu0 %3367, %v67_v58  }
  0x3a   :  { %3187 = vmatmul.mubr.msk.f32.gmra.mxu1 %vm133_vm0, %v122_v57 }
  0x3b   :  { %3189 = vmatprep.mubr.msk.f32.mxu1 %vm133_vm0, %v123_v59  ;;  %542 = vperm.xlu1 %3368, %v82_v60  }
  0x3c   :  { %537 = vperm.xlu0 %3367, %v81_v62  }
  0x3e   :  { %3190 = vmatmul.mubr.msk.f32.gmra.mxu1 %vm133_vm0, %v124_v61 }
  0x3f   :  { %3192 = vmatprep.mubr.msk.f32.mxu1 %vm133_vm0, %v125_v63  ;;  %462 = vperm.xlu1 %3368, %v66_v0  }
  0x40   :  { %457 = vperm.xlu0 %3367, %v65_v2  }
  0x42   :  { %3193 = vmatmul.mubr.msk.f32.gmra.mxu1 %vm133_vm0, %v126_v1 }
  0x43   :  { %3195 = vmatprep.mubr.msk.f32.mxu1 %vm133_vm0, %v127_v3 }
  0x46   :  { %3196 = vmatmul.mubr.msk.f32.gmra.mxu1 %vm133_vm0, %v128_v4 }
  0x47   :  { %855 = vmatprep.mubr.bf16.mxu1 %v3739_v5 }
  0x7e   :  { %v3744_v7 = vpop.permute.xlu1 %527 }
  0x7f   :  { %v3742_v6 = vpop.permute.xlu0 %607  ;;  %5130 = vst [vmem:[#allocation3_spill] sm:$0xff] %v3744_v7 }
  0x82   :  { %v3754_v12 = vpop.permute.xlu1 %532 }
  0x83   :  { %v3750_v10 = vpop.permute.xlu0 %612 }
  0x84   :  { %5132 = vst [vmem:[#allocation5_spill] sm:$0xff] %v3750_v10 }
  0x86   :  { %v3764_v17 = vpop.permute.xlu1 %602 }
  0x87   :  { %v3760_v15 = vpop.permute.xlu0 %597 }
  0x8a   :  { %v3774_v22 = vpop.permute.xlu1 %522 }
  0x8b   :  { %v3770_v20 = vpop.permute.xlu0 %517 }
  0x8e   :  { %v3780_v27 = vpop.permute.xlu1 %592 }
  0x8f   :  { %v3778_v25 = vpop.permute.xlu0 %587 }
  0x92   :  { %v3784_v32 = vpop.permute.xlu1 %512 }
  0x93   :  { %v3782_v30 = vpop.permute.xlu0 %507 }
  0x96   :  { %v3792_v37 = vpop.permute.xlu1 %582 }
  0x97   :  { %v3788_v35 = vpop.permute.xlu0 %577 }
  0x9a   :  { %v3802_v42 = vpop.permute.xlu1 %502 }
  0x9b   :  { %v3798_v40 = vpop.permute.xlu0 %497 }
  0x9e   :  { %v3806_v47 = vpop.permute.xlu1 %572 }
  0x9f   :  { %v3804_v45 = vpop.permute.xlu0 %567 }
  0xa2   :  { %v3810_v52 = vpop.permute.xlu1 %492 }
  0xa3   :  { %v3808_v50 = vpop.permute.xlu0 %487 }
  0xa6   :  { %v3814_v57 = vpop.permute.xlu1 %562 }
  0xa7   :  { %v3812_v55 = vpop.permute.xlu0 %557 }
  0xaa   :  { %v3823_v2 = vpop.permute.xlu1 %482 }
  0xab   :  { %v3817_v61 = vpop.permute.xlu0 %477  ;;  %5134 = vst [vmem:[#allocation7_spill] sm:$0xff] %v3823_v2 }
  0xac   :  { %5133 = vst [vmem:[#allocation6_spill] sm:$0xff] %v3817_v61 }
  0xca   :  { %v3746_v8 = vpop.f32.mrf.mxu1 }
  0xcb   :  { %5131 = vst [vmem:[#allocation4_spill] sm:$0xff] %v3746_v8 }
  0xcc   :  { %v3748_v9 = vpop.f32.mrf.mxu1 }
  0xce   :  { %v3752_v11 = vpop.f32.mrf.mxu1 }
  0xd0   :  { %v3756_v13 = vpop.f32.mrf.mxu1 }
  0xd2   :  { %v3758_v14 = vpop.f32.mrf.mxu1 }
  0xd4   :  { %v3762_v16 = vpop.f32.mrf.mxu1 }
  0xd6   :  { %v3766_v18 = vpop.f32.mrf.mxu1 }
  0xd8   :  { %v3768_v19 = vpop.f32.mrf.mxu1 }
  0xda   :  { %v3772_v21 = vpop.f32.mrf.mxu1 }
  0xdc   :  { %v3776_v23 = vpop.f32.mrf.mxu1 }
  0xde   :  { %v3167_v24 = vpop.f32.mrf.mxu1 }
  0xe0   :  { %v346_v26 = vpop.f32.mrf.mxu1 }
  0xe2   :  { %v3170_v28 = vpop.f32.mrf.mxu1 }
  0xe4   :  { %v356_v29 = vpop.f32.mrf.mxu1 }
  0xe5   :  { %v627_v5 = vmul.f32 %v3770_v20, %v356_v29 }
  0xe6   :  { %v3173_v31 = vpop.f32.mrf.mxu1 }
  0xe7   :  { %v630_v1 = vmul.f32 %v3173_v31, %v3754_v12  ;;  %v625_v31 = vmul.f32 %v3782_v30, %v346_v26  ;;  %v624_v26 = vmul.f32 %v3772_v21, %v3802_v42 }
  0xe8   :  { %v366_v33 = vpop.f32.mrf.mxu1 }
  0xe9   :  { %v629_v59 = vmul.f32 %v3744_v7, %v366_v33 }
  0xea   :  { %v3786_v34 = vpop.f32.mrf.mxu1 }
  0xeb   :  { %v654_v8 = vpack.c.bf16 %v630_v1, %v629_v59 }
  0xec   :  { %v3790_v36 = vpop.f32.mrf.mxu1 }
  0xee   :  { %v3794_v38 = vpop.f32.mrf.mxu1 }
  0xf0   :  { %v3796_v39 = vpop.f32.mrf.mxu1 }
  0xf2   :  { %v3800_v41 = vpop.f32.mrf.mxu1 }
  0xf3   :  { %v636_v21 = vmul.f32 %v3800_v41, %v3814_v57 }
  0xf4   :  { %v396_v43 = vpop.f32.mrf.mxu1 }
  0xf6   :  { %v3185_v44 = vpop.f32.mrf.mxu1 }
  0xf8   :  { %v406_v46 = vpop.f32.mrf.mxu1 }
  0xfa   :  { %v3188_v48 = vpop.f32.mrf.mxu1 }
  0xfc   :  { %v416_v49 = vpop.f32.mrf.mxu1 }
  0xfd   :  { %v639_v29 = vmul.f32 %v3788_v35, %v416_v49 }
  0xfe   :  { %v3191_v51 = vpop.f32.mrf.mxu1 }
 0x100   :  { %v426_v53 = vpop.f32.mrf.mxu1 }
 0x101   :  { %v641_v33 = vmul.f32 %v3778_v25, %v426_v53  ;;  %v626_v53 = vmul.f32 %v3167_v24, %v3784_v32  ;;  %v621_v24 = vmul.f32 %v3808_v50, %v3768_v19 }
 0x102   :  { %v3194_v54 = vpop.f32.mrf.mxu1 }
 0x103   :  { %v644_v3 = vmul.f32 %v3194_v54, %v3764_v17  ;;  %v3833_v54 = vpop.permute.xlu1 %552 }
 0x104   :  { %v436_v56 = vpop.f32.mrf.mxu1 }
 0x105   :  { %v643_v62 = vmul.f32 %v3760_v15, %v436_v56  ;;  %v628_v56 = vmul.f32 %v3170_v28, %v3774_v22  ;;  %v652_v28 = vpack.c.bf16 %v626_v53, %v625_v31 }
 0x106   :  { %v3197_v58 = vpop.f32.mrf.mxu1 }
 0x107   :  { %v646_v63 = vmul.f32 %v3197_v58, %v3750_v10  ;;  %v661_v7 = vpack.c.bf16 %v644_v3, %v643_v62  ;;  %v3829_v58 = vpop.permute.xlu0 %547  ;;  %v653_v10 = vpack.c.bf16 %v628_v56, %v627_v5  ;;  %v640_v62 = vmul.f32 %v3188_v48, %v3792_v37  ;;  %v3845_v49 = vpop.permute.xlu1 %472 }
 0x108   :  { %v446_v60 = vpop.f32.mrf.mxu1  ;;  %v633_v19 = vmul.f32 %v3829_v58, %v3796_v39  ;;  %v618_v39 = vmul.f32 %v3752_v11, %v3845_v49  ;;  %v3886_v11 = vld [vmem:[%s5008_s0] ss:$8 sps:$4 sm:$0xff]  }
 0x109   :  { %v645_v0 = vmul.f32 %v3742_v6, %v446_v60  ;;  %v642_v60 = vmul.f32 %v3191_v51, %v3780_v27  ;;  %v659_v5 = vpack.c.bf16 %v640_v62, %v639_v29  ;;  %v3903_v62 = vld [vmem:[%s5008_s0 + $0x24] ss:$8 sps:$4 sm:$0xff]  }
 0x10a   :  { %5142 = vst [vmem:[#allocation13_spill] sm:$0xff] %v3903_v62 }
 0x10b   :  { %v662_v4 = vpack.c.bf16 %v646_v63, %v645_v0  ;;  %v660_v59 = vpack.c.bf16 %v642_v60, %v641_v33  ;;  %v3840_v51 = vpop.permute.xlu0 %467  ;;  %v3859_v3 = vpop.permute.xlu1 %542 }
 0x10c   :  { %5135 = vst [vmem:[#allocation8_spill] sm:$0xff] %v3859_v3  ;;  %v617_v41 = vmul.f32 %v3840_v51, %v3756_v13 }
 0x10d   :  { %2698 = vmatprep.subr.bf16.mxu1 %v662_v4  ;;  %v634_v4 = vmul.f32 %v3794_v38, %v3833_v54  ;;  %v632_v38 = vmul.f32 %v3786_v34, %v3859_v3  ;;  %v3891_v34 = vld [vmem:[%s5008_s0 + $0x14] ss:$8 sps:$4 sm:$0xff]  }
 0x10e   :  { %2699 = vmatpush3.bf16.msra.mxu1 %v654_v8  ;;  %v623_v8 = vmul.f32 %v3798_v40, %v3776_v23  ;;  %v635_v23 = vmul.f32 %v3812_v55, %v396_v43  ;;  %v648_v31 = vpack.c.bf16 %v618_v39, %v617_v41  ;;  %5140 = vst [vmem:[#allocation11_spill] sm:$0xff] %v3891_v34  ;;  %v1088_v41 = vld [vmem:[%s5009_s5 + $0x8] sm:$0xff]  ;;  %v4030_v39 = vld [vmem:[%s5008_s0 + $0xb0] ss:$8 sps:$4 sm:$0xff]  }
 0x10f   :  { %2700 = vmatprep.subr.bf16.mxu1 %v661_v7  ;;  %v637_v7 = vmul.f32 %v3804_v45, %v406_v46  ;;  %v622_v46 = vmul.f32 %v3766_v18, %v3810_v52  ;;  %v3853_v0 = vpop.permute.xlu0 %537  ;;  %v620_v18 = vmul.f32 %v3758_v14, %v3823_v2  ;;  %v656_v60 = vpack.c.bf16 %v634_v4, %v633_v19  ;;  %v3875_v14 = vpop.permute.xlu1 %462  ;;  %v3994_v19 = vld [vmem:[%s5008_s0 + $0x90] ss:$8 sps:$4 sm:$0xff]  }
 0x110   :  { %v651_v48 = vpack.c.bf16 %v624_v26, %v623_v8  ;;  %v657_v43 = vpack.c.bf16 %v636_v21, %v635_v23  ;;  %v631_v56 = vmul.f32 %v3853_v0, %v3790_v36  ;;  %5137 = vst [vmem:[#allocation10_spill] sm:$0xff] %v3875_v14  ;;  %v3910_v8 = vld [vmem:[%s5008_s0 + $0x20] ss:$8 sps:$4 sm:$0xff]   ;;  %v3975_v21 = vld [vmem:[%s5008_s0 + $0x84] ss:$8 sps:$4 sm:$0xff]   ;;  %5157 = vst [vmem:[#allocation28_spill] sm:$0xff] %v3994_v19 }
 0x111   :  { %v650_v1 = vpack.c.bf16 %v622_v46, %v621_v24  ;;  %5143 = vst [vmem:[#allocation14_spill] sm:$0xff] %v3910_v8  ;;  %v3934_v26 = vld [vmem:[%s5008_s0 + $0x40] ss:$8 sps:$4 sm:$0xff]   ;;  %v3946_v24 = vld [vmem:[%s5008_s0 + $0x50] ss:$8 sps:$4 sm:$0xff]   ;;  %5154 = vst [vmem:[#allocation25_spill] sm:$0xff] %v3975_v21 }
 0x112   :  { %2701 = vmatpush3.bf16.msra.mxu1 %v653_v10  ;;  %v638_v10 = vmul.f32 %v3185_v44, %v3806_v47  ;;  %v619_v44 = vmul.f32 %v3817_v61, %v3762_v16  ;;  %v655_v29 = vpack.c.bf16 %v632_v38, %v631_v56  ;;  %5147 = vst [vmem:[#allocation18_spill] sm:$0xff] %v3934_v26  ;;  %5149 = vst [vmem:[#allocation20_spill] sm:$0xff] %v3946_v24  ;;  %v3958_v23 = vld [vmem:[%s5008_s0 + $0x60] ss:$8 sps:$4 sm:$0xff]   ;;  %v3970_v46 = vld [vmem:[%s5008_s0 + $0x70] ss:$8 sps:$4 sm:$0xff]  }
 0x113   :  { %2702 = vmatprep.subr.bf16.mxu1 %v660_v59  ;;  %v3869_v16 = vpop.permute.xlu0 %457  ;;  %v5138_v59 = vld [vmem:[#allocation4_spill] sm:$0xff]  ;;  %5151 = vst [vmem:[#allocation22_spill] sm:$0xff] %v3958_v23  ;;  %5153 = vst [vmem:[#allocation24_spill] sm:$0xff] %v3970_v46  ;;  %v1087_v56 = vld [vmem:[%s5009_s5] sm:$0xff] }
 0x114   :  { %v658_v63 = vpack.c.bf16 %v638_v10, %v637_v7  ;;  %v649_v33 = vpack.c.bf16 %v620_v18, %v619_v44  ;;  %5136 = vst [vmem:[#allocation9_spill] sm:$0xff] %v3869_v16  ;;  %v615_v13 = vmul.f32 %v3869_v16, %v3748_v9  ;;  %v616_v53 = vmul.f32 %v5138_v59, %v3875_v14  ;;  %v3898_v9 = vld [vmem:[%s5008_s0 + $0x10] ss:$8 sps:$4 sm:$0xff]   ;;  %v3939_v10 = vld [vmem:[%s5008_s0 + $0x54] ss:$8 sps:$4 sm:$0xff]  }
 0x115   :  { %5139 = vst [vmem:[#allocation4_spill] sm:$0xff] %v3886_v11  ;;  %5141 = vst [vmem:[#allocation12_spill] sm:$0xff] %v3898_v9  ;;  %v3922_v7 = vld [vmem:[%s5008_s0 + $0x30] ss:$8 sps:$4 sm:$0xff]   ;;  %v3982_v44 = vld [vmem:[%s5008_s0 + $0x80] ss:$8 sps:$4 sm:$0xff]  }
 0x116   :  { %2703 = vmatpush3.bf16.msra.mxu1 %v652_v28  ;;  %v647_v36 = vpack.c.bf16 %v616_v53, %v615_v13  ;;  %v3915_v28 = vld [vmem:[%s5008_s0 + $0x34] ss:$8 sps:$4 sm:$0xff]   ;;  %5145 = vst [vmem:[#allocation16_spill] sm:$0xff] %v3922_v7  ;;  %5148 = vst [vmem:[#allocation19_spill] sm:$0xff] %v3939_v10  ;;  %v4035_v38 = vld [vmem:[%s5008_s0 + $0xc4] ss:$8 sps:$4 sm:$0xff]  }
 0x117   :  { %2704 = vmatprep.subr.bf16.mxu1 %v659_v5  ;;  %5144 = vst [vmem:[#allocation15_spill] sm:$0xff] %v3915_v28  ;;  %v3927_v5 = vld [vmem:[%s5008_s0 + $0x44] ss:$8 sps:$4 sm:$0xff]   ;;  %5155 = vst [vmem:[#allocation26_spill] sm:$0xff] %v3982_v44  ;;  %v1090_v18 = vld [vmem:[%s5009_s5 + $0x18] sm:$0xff] }
 0x118   :  { %5146 = vst [vmem:[#allocation17_spill] sm:$0xff] %v3927_v5  ;;  %3198 = vmatprep.subr.mxu0 %v1090_v18  ;;  %v1089_v4 = vld [vmem:[%s5009_s5 + $0x10] sm:$0xff]  ;;  %5161 = vst [vmem:[#allocation32_spill] sm:$0xff] %v4030_v39  ;;  %v4042_v13 = vld [vmem:[%s5008_s0 + $0xc0] ss:$8 sps:$4 sm:$0xff]  }
 0x119   :  { %3199 = vmatpush3.msra.mxu0 %v1090_v18  ;;  %5162 = vst [vmem:[#allocation33_spill] sm:$0xff] %v4035_v38  ;;  %5163 = vst [vmem:[#allocation34_spill] sm:$0xff] %v4042_v13  ;;  %v4059_v59 = vld [vmem:[%s5008_s0 + $0xe4] ss:$8 sps:$4 sm:$0xff]   ;;  %v4066_v53 = vld [vmem:[%s5008_s0 + $0xe0] ss:$8 sps:$4 sm:$0xff]  }
 0x11a   :  { %2705 = vmatpush3.bf16.msra.mxu1 %v651_v48  ;;  %v3951_v48 = vld [vmem:[%s5008_s0 + $0x64] ss:$8 sps:$4 sm:$0xff]   ;;  %3200 = vmatprep.subr.mxu0 %v1089_v4  ;;  %5166 = vst [vmem:[#allocation37_spill] sm:$0xff] %v4059_v59  ;;  %5167 = vst [vmem:[#allocation38_spill] sm:$0xff] %v4066_v53  ;;  %v4078_v18 = vld [vmem:[%s5008_s0 + $0xf0] ss:$8 sps:$4 sm:$0xff]  }
 0x11b   :  { %2706 = vmatprep.subr.bf16.mxu1 %v658_v63  ;;  %5150 = vst [vmem:[#allocation21_spill] sm:$0xff] %v3951_v48  ;;  %v3963_v63 = vld [vmem:[%s5008_s0 + $0x74] ss:$8 sps:$4 sm:$0xff]   ;;  %3201 = vmatpush3.msra.mxu0 %v1089_v4  ;;  %5169 = vst [vmem:[#allocation40_spill] sm:$0xff] %v4078_v18 }
 0x11c   :  { %5152 = vst [vmem:[#allocation23_spill] sm:$0xff] %v3963_v63  ;;  %3202 = vmatprep.subr.mxu0 %v1088_v41 }
 0x11d   :  { %3203 = vmatpush3.msra.mxu0 %v1088_v41 }
 0x11e   :  { %2707 = vmatpush3.bf16.msra.mxu1 %v650_v1  ;;  %v3987_v1 = vld [vmem:[%s5008_s0 + $0x94] ss:$8 sps:$4 sm:$0xff]   ;;  %3204 = vmatprep.subr.mxu0 %v1087_v56 }
 0x11f   :  { %2708 = vmatprep.subr.bf16.mxu1 %v657_v43  ;;  %5156 = vst [vmem:[#allocation27_spill] sm:$0xff] %v3987_v1  ;;  %v3999_v43 = vld [vmem:[%s5008_s0 + $0xa4] ss:$8 sps:$4 sm:$0xff]   ;;  %3205 = vmatpush3.msra.mxu0 %v1087_v56 }
 0x120   :  { %5158 = vst [vmem:[#allocation29_spill] sm:$0xff] %v3999_v43 }
 0x122   :  { %2709 = vmatpush3.bf16.msra.mxu1 %v649_v33  ;;  %v4015_v33 = vld [vmem:[%s5008_s0 + $0xa0] ss:$8 sps:$4 sm:$0xff]  }
 0x123   :  { %2710 = vmatprep.subr.bf16.mxu1 %v656_v60  ;;  %5159 = vst [vmem:[#allocation30_spill] sm:$0xff] %v4015_v33  ;;  %v4023_v60 = vld [vmem:[%s5008_s0 + $0xb4] ss:$8 sps:$4 sm:$0xff]  }
 0x124   :  { %5160 = vst [vmem:[#allocation31_spill] sm:$0xff] %v4023_v60 }
 0x126   :  { %2711 = vmatpush3.bf16.msra.mxu1 %v648_v31  ;;  %v4047_v31 = vld [vmem:[%s5008_s0 + $0xd4] ss:$8 sps:$4 sm:$0xff]  }
 0x127   :  { %2712 = vmatprep.subr.bf16.mxu1 %v655_v29  ;;  %5164 = vst [vmem:[#allocation35_spill] sm:$0xff] %v4047_v31  ;;  %v4054_v29 = vld [vmem:[%s5008_s0 + $0xd0] ss:$8 sps:$4 sm:$0xff]  }
 0x128   :  { %5165 = vst [vmem:[#allocation36_spill] sm:$0xff] %v4054_v29 }
 0x12a   :  { %2713 = vmatpush3.bf16.msra.mxu1 %v647_v36  ;;  %v4071_v36 = vld [vmem:[%s5008_s0 + $0xf4] ss:$8 sps:$4 sm:$0xff]  }
 0x12b   :  { %5168 = vst [vmem:[#allocation39_spill] sm:$0xff] %v4071_v36 }
 0x12d   :  { %856 = vmatmul.mubr.bf16.vlgmr.msra.gmra.mxu1 %v3886_v11 }
 0x12e   :  { %863 = vmatprep.mubr.bf16.mxu1 %v3891_v34 }
 0x135   :  { %864 = vmatmul.mubr.bf16.gmra.mxu1 %v3898_v9 }
 0x136   :  { %871 = vmatprep.mubr.bf16.mxu1 %v3903_v62 }
 0x13d   :  { %872 = vmatmul.mubr.bf16.gmra.mxu1 %v3910_v8 }
 0x13e   :  { %879 = vmatprep.mubr.bf16.mxu1 %v3915_v28 }
 0x145   :  { %880 = vmatmul.mubr.bf16.gmra.mxu1 %v3922_v7 }
 0x146   :  { %887 = vmatprep.mubr.bf16.mxu1 %v3927_v5 }
 0x14d   :  { %888 = vmatmul.mubr.bf16.gmra.mxu1 %v3934_v26 }
 0x14e   :  { %895 = vmatprep.mubr.bf16.mxu1 %v3939_v10 }
 0x155   :  { %896 = vmatmul.mubr.bf16.gmra.mxu1 %v3946_v24 }
 0x156   :  { %903 = vmatprep.mubr.bf16.mxu1 %v3951_v48 }
 0x15d   :  { %904 = vmatmul.mubr.bf16.gmra.mxu1 %v3958_v23 }
 0x15e   :  { %911 = vmatprep.mubr.bf16.mxu1 %v3963_v63 }
 0x165   :  { %912 = vmatmul.mubr.bf16.gmra.mxu1 %v3970_v46 }
 0x166   :  { %919 = vmatprep.mubr.bf16.mxu1 %v3975_v21 }
 0x16d   :  { %920 = vmatmul.mubr.bf16.gmra.mxu1 %v3982_v44 }
 0x16e   :  { %927 = vmatprep.mubr.bf16.mxu1 %v3987_v1 }
 0x175   :  { %928 = vmatmul.mubr.bf16.gmra.mxu1 %v3994_v19 }
 0x176   :  { %935 = vmatprep.mubr.bf16.mxu1 %v3999_v43 }
 0x17d   :  { %936 = vmatmul.mubr.bf16.gmra.mxu1 %v4015_v33 }
 0x17e   :  { %943 = vmatprep.mubr.bf16.mxu1 %v4023_v60 }
 0x185   :  { %944 = vmatmul.mubr.bf16.gmra.mxu1 %v4030_v39 }
 0x186   :  { %951 = vmatprep.mubr.bf16.mxu1 %v4035_v38 }
 0x18d   :  { %952 = vmatmul.mubr.bf16.gmra.mxu1 %v4042_v13 }
 0x18e   :  { %959 = vmatprep.mubr.bf16.mxu1 %v4047_v31 }
 0x195   :  { %960 = vmatmul.mubr.bf16.gmra.mxu1 %v4054_v29  ;;  %v4084_v29 = vld [vmem:[%s5010_s4] ss:$0 sm:$0xff] }
 0x196   :  { %967 = vmatprep.mubr.bf16.mxu1 %v4059_v59 }
 0x19d   :  { %968 = vmatmul.mubr.bf16.gmra.mxu1 %v4066_v53 }
 0x19e   :  { %975 = vmatprep.mubr.bf16.mxu1 %v4071_v36 }
 0x1a5   :  { %976 = vmatmul.mubr.bf16.gmra.mxu1 %v4078_v18 }
 0x1ed   :  { %v2714_v4 = vpop.f32.mrf.mxu1 }
 0x1ef   :  { %v2715_v41 = vpop.f32.mrf.mxu1 }
 0x1f0   :  { %v2716_v56 = vadd.f32 %v2715_v41, %v2714_v4 }
 0x1f1   :  { %v2717_v59 = vpop.f32.mrf.mxu1 }
 0x1f2   :  { %v984_v53 = vmul.f32 %v2716_v56, %v3869_v16 }
 0x1f3   :  { %v2718_v31 = vpop.f32.mrf.mxu1 }
 0x1f4   :  { %v2719_v36 = vadd.f32 %v2718_v31, %v2717_v59  ;;  %v4088_v13 = vadd.f32 %v4084_v29, %v984_v53 }
 0x1f5   :  { %v2720_v38 = vpop.f32.mrf.mxu1 }
 0x1f6   :  { %5170 = vst [vmem:[#allocation41_spill] sm:$0xff] %v4088_v13  ;;  %v985_v39 = vmul.f32 %v2719_v36, %v3875_v14  ;;  %v5031_v18 = vmax.f32 %v4088_v13, 0.0 }
 0x1f7   :  { %v2721_v60 = vpop.f32.mrf.mxu1 }
 0x1f8   :  { %v4093_v4 = vadd.f32 %v4084_v29, %v985_v39  ;;  %v2722_v41 = vadd.f32 %v2721_v60, %v2720_v38  ;;  %3206 = vmatprep.mubr.msk.f32.mxu0 %vm133_vm0, %v5031_v18 }
 0x1f9   :  { %v2723_v56 = vpop.f32.mrf.mxu1 }
 0x1fa   :  { %5171 = vst [vmem:[#allocation42_spill] sm:$0xff] %v4093_v4  ;;  %v5034_v31 = vmax.f32 %v4093_v4, 0.0  ;;  %v986_v59 = vmul.f32 %v2722_v41, %v3840_v51 }
 0x1fb   :  { %v2724_v53 = vpop.f32.mrf.mxu1 }
 0x1fc   :  { %v4101_v33 = vadd.f32 %v4084_v29, %v986_v59  ;;  %v2725_v36 = vadd.f32 %v2724_v53, %v2723_v56  ;;  %3207 = vmatmul.mubr.msk.f32.vlgmr.msra.gmra.mxu0 %vm133_vm0, %v5034_v31 }
 0x1fd   :  { %v2726_v39 = vpop.f32.mrf.mxu1 }
 0x1fe   :  { %5172 = vst [vmem:[#allocation43_spill] sm:$0xff] %v4101_v33  ;;  %v5036_v60 = vmax.f32 %v4101_v33, 0.0  ;;  %v987_v38 = vmul.f32 %v2725_v36, %v3845_v49 }
 0x1ff   :  { %v2727_v18 = vpop.f32.mrf.mxu1 }
 0x200   :  { %v4109_v13 = vadd.f32 %v4084_v29, %v987_v38  ;;  %v2728_v43 = vadd.f32 %v2727_v18, %v2726_v39  ;;  %3209 = vmatprep.mubr.msk.f32.mxu0 %vm133_vm0, %v5036_v60 }
 0x201   :  { %v2729_v41 = vpop.f32.mrf.mxu1 }
 0x202   :  { %5173 = vst [vmem:[#allocation44_spill] sm:$0xff] %v4109_v13  ;;  %v5038_v56 = vmax.f32 %v4109_v13, 0.0  ;;  %v988_v59 = vmul.f32 %v2728_v43, %v3817_v61 }
 0x203   :  { %v2730_v53 = vpop.f32.mrf.mxu1 }
 0x204   :  { %v4117_v31 = vadd.f32 %v4084_v29, %v988_v59  ;;  %v2731_v4 = vadd.f32 %v2730_v53, %v2729_v41  ;;  %3210 = vmatmul.mubr.msk.f32.gmra.mxu0 %vm133_vm0, %v5038_v56 }
 0x205   :  { %v2732_v36 = vpop.f32.mrf.mxu1 }
 0x206   :  { %5174 = vst [vmem:[#allocation45_spill] sm:$0xff] %v4117_v31  ;;  %v5040_v18 = vmax.f32 %v4117_v31, 0.0  ;;  %v989_v39 = vmul.f32 %v2731_v4, %v3823_v2 }
 0x207   :  { %v2733_v38 = vpop.f32.mrf.mxu1 }
 0x208   :  { %v4125_v60 = vadd.f32 %v4084_v29, %v989_v39  ;;  %v2734_v33 = vadd.f32 %v2733_v38, %v2732_v36  ;;  %3212 = vmatprep.mubr.msk.f32.mxu0 %vm133_vm0, %v5040_v18 }
 0x209   :  { %v2735_v43 = vpop.f32.mrf.mxu1 }
 0x20a   :  { %5175 = vst [vmem:[#allocation46_spill] sm:$0xff] %v4125_v60  ;;  %v5042_v41 = vmax.f32 %v4125_v60, 0.0  ;;  %v990_v59 = vmul.f32 %v2734_v33, %v3808_v50 }
 0x20b   :  { %v2736_v53 = vpop.f32.mrf.mxu1 }
 0x20c   :  { %v4133_v56 = vadd.f32 %v4084_v29, %v990_v59  ;;  %v2737_v13 = vadd.f32 %v2736_v53, %v2735_v43  ;;  %3213 = vmatmul.mubr.msk.f32.gmra.mxu0 %vm133_vm0, %v5042_v41 }
 0x20d   :  { %v2738_v4 = vpop.f32.mrf.mxu1 }
 0x20e   :  { %5176 = vst [vmem:[#allocation47_spill] sm:$0xff] %v4133_v56  ;;  %v5044_v36 = vmax.f32 %v4133_v56, 0.0  ;;  %v991_v39 = vmul.f32 %v2737_v13, %v3810_v52 }
 0x20f   :  { %v2739_v38 = vpop.f32.mrf.mxu1 }
 0x210   :  { %v4141_v18 = vadd.f32 %v4084_v29, %v991_v39  ;;  %v2740_v31 = vadd.f32 %v2739_v38, %v2738_v4  ;;  %3215 = vmatprep.mubr.msk.f32.mxu0 %vm133_vm0, %v5044_v36 }
 0x211   :  { %v2741_v33 = vpop.f32.mrf.mxu1 }
 0x212   :  { %5177 = vst [vmem:[#allocation48_spill] sm:$0xff] %v4141_v18  ;;  %v5046_v43 = vmax.f32 %v4141_v18, 0.0  ;;  %v992_v59 = vmul.f32 %v2740_v31, %v3798_v40 }
 0x213   :  { %v2742_v53 = vpop.f32.mrf.mxu1 }
 0x214   :  { %v4149_v41 = vadd.f32 %v4084_v29, %v992_v59  ;;  %v2743_v60 = vadd.f32 %v2742_v53, %v2741_v33  ;;  %3216 = vmatmul.mubr.msk.f32.gmra.mxu0 %vm133_vm0, %v5046_v43 }
 0x215   :  { %v2744_v13 = vpop.f32.mrf.mxu1 }
 0x216   :  { %5178 = vst [vmem:[#allocation49_spill] sm:$0xff] %v4149_v41  ;;  %v5048_v4 = vmax.f32 %v4149_v41, 0.0  ;;  %v993_v39 = vmul.f32 %v2743_v60, %v3802_v42 }
 0x217   :  { %v2745_v38 = vpop.f32.mrf.mxu1 }
 0x218   :  { %v4157_v36 = vadd.f32 %v4084_v29, %v993_v39  ;;  %v2746_v56 = vadd.f32 %v2745_v38, %v2744_v13  ;;  %3218 = vmatprep.mubr.msk.f32.mxu0 %vm133_vm0, %v5048_v4 }
 0x219   :  { %v2747_v31 = vpop.f32.mrf.mxu1 }
 0x21a   :  { %5179 = vst [vmem:[#allocation50_spill] sm:$0xff] %v4157_v36  ;;  %v5050_v33 = vmax.f32 %v4157_v36, 0.0  ;;  %v994_v59 = vmul.f32 %v2746_v56, %v3782_v30 }
 0x21b   :  { %v2748_v53 = vpop.f32.mrf.mxu1 }
 0x21c   :  { %v4165_v43 = vadd.f32 %v4084_v29, %v994_v59  ;;  %v2749_v18 = vadd.f32 %v2748_v53, %v2747_v31  ;;  %3219 = vmatmul.mubr.msk.f32.gmra.mxu0 %vm133_vm0, %v5050_v33 }
 0x21d   :  { %v2750_v60 = vpop.f32.mrf.mxu1 }
 0x21e   :  { %5180 = vst [vmem:[#allocation51_spill] sm:$0xff] %v4165_v43  ;;  %v5052_v13 = vmax.f32 %v4165_v43, 0.0  ;;  %v995_v39 = vmul.f32 %v2749_v18, %v3784_v32 }
 0x21f   :  { %v2751_v38 = vpop.f32.mrf.mxu1 }
 0x220   :  { %v4173_v4 = vadd.f32 %v4084_v29, %v995_v39  ;;  %v2752_v41 = vadd.f32 %v2751_v38, %v2750_v60  ;;  %3221 = vmatprep.mubr.msk.f32.mxu0 %vm133_vm0, %v5052_v13 }
 0x221   :  { %v2753_v56 = vpop.f32.mrf.mxu1 }
 0x222   :  { %5181 = vst [vmem:[#allocation52_spill] sm:$0xff] %v4173_v4  ;;  %v5054_v31 = vmax.f32 %v4173_v4, 0.0  ;;  %v996_v59 = vmul.f32 %v2752_v41, %v3770_v20 }
 0x223   :  { %v2754_v53 = vpop.f32.mrf.mxu1 }
 0x224   :  { %v4181_v33 = vadd.f32 %v4084_v29, %v996_v59  ;;  %v2755_v36 = vadd.f32 %v2754_v53, %v2753_v56  ;;  %3222 = vmatmul.mubr.msk.f32.gmra.mxu0 %vm133_vm0, %v5054_v31  ;;  %v5184_v59 = vld [vmem:[#allocation3_spill] sm:$0xff] }
 0x225   :  { %v2756_v18 = vpop.f32.mrf.mxu1 }
 0x226   :  { %5182 = vst [vmem:[#allocation53_spill] sm:$0xff] %v4181_v33  ;;  %v5057_v60 = vmax.f32 %v4181_v33, 0.0  ;;  %v997_v39 = vmul.f32 %v2755_v36, %v3774_v22 }
 0x227   :  { %v2757_v38 = vpop.f32.mrf.mxu1 }
 0x228   :  { %v4189_v13 = vadd.f32 %v4084_v29, %v997_v39  ;;  %v2758_v43 = vadd.f32 %v2757_v38, %v2756_v18  ;;  %3224 = vmatprep.mubr.msk.f32.mxu0 %vm133_vm0, %v5057_v60 }
 0x229   :  { %v2759_v41 = vpop.f32.mrf.mxu1 }
 0x22a   :  { %5183 = vst [vmem:[#allocation54_spill] sm:$0xff] %v4189_v13  ;;  %v5059_v56 = vmax.f32 %v4189_v13, 0.0  ;;  %v998_v53 = vmul.f32 %v2758_v43, %v5184_v59 }
 0x22b   :  { %v2760_v31 = vpop.f32.mrf.mxu1 }
 0x22c   :  { %v4197_v4 = vadd.f32 %v4084_v29, %v998_v53  ;;  %v2761_v19 = vadd.f32 %v2760_v31, %v2759_v41  ;;  %3225 = vmatmul.mubr.msk.f32.gmra.mxu0 %vm133_vm0, %v5059_v56 }
 0x22d   :  { %v2762_v36 = vpop.f32.mrf.mxu1 }
 0x22e   :  { %5185 = vst [vmem:[#allocation3_spill] sm:$0xff] %v4197_v4  ;;  %v5061_v18 = vmax.f32 %v4197_v4, 0.0  ;;  %v999_v39 = vmul.f32 %v2761_v19, %v3754_v12 }
 0x22f   :  { %v2763_v38 = vpop.f32.mrf.mxu1 }
 0x230   :  { %v4205_v60 = vadd.f32 %v4084_v29, %v999_v39  ;;  %v2764_v33 = vadd.f32 %v2763_v38, %v2762_v36  ;;  %3227 = vmatprep.mubr.msk.f32.mxu0 %vm133_vm0, %v5061_v18 }
 0x231   :  { %v2765_v43 = vpop.f32.mrf.mxu1 }
 0x232   :  { %5186 = vst [vmem:[#allocation55_spill] sm:$0xff] %v4205_v60  ;;  %v5063_v31 = vmax.f32 %v4205_v60, 0.0  ;;  %v1000_v41 = vmul.f32 %v2764_v33, %v3853_v0 }
 0x233   :  { %v2766_v53 = vpop.f32.mrf.mxu1 }
 0x234   :  { %v4213_v56 = vadd.f32 %v4084_v29, %v1000_v41  ;;  %v2767_v13 = vadd.f32 %v2766_v53, %v2765_v43  ;;  %3228 = vmatmul.mubr.msk.f32.gmra.mxu0 %vm133_vm0, %v5063_v31 }
 0x235   :  { %v2768_v19 = vpop.f32.mrf.mxu1 }
 0x236   :  { %5187 = vst [vmem:[#allocation56_spill] sm:$0xff] %v4213_v56  ;;  %v5065_v36 = vmax.f32 %v4213_v56, 0.0  ;;  %v1001_v39 = vmul.f32 %v2767_v13, %v3859_v3 }
 0x237   :  { %v2769_v38 = vpop.f32.mrf.mxu1 }
 0x238   :  { %v4221_v18 = vadd.f32 %v4084_v29, %v1001_v39  ;;  %v2770_v4 = vadd.f32 %v2769_v38, %v2768_v19  ;;  %3230 = vmatprep.mubr.msk.f32.mxu0 %vm133_vm0, %v5065_v36 }
 0x239   :  { %v2771_v33 = vpop.f32.mrf.mxu1 }
 0x23a   :  { %5188 = vst [vmem:[#allocation57_spill] sm:$0xff] %v4221_v18  ;;  %v5067_v43 = vmax.f32 %v4221_v18, 0.0  ;;  %v1002_v41 = vmul.f32 %v2770_v4, %v3829_v58 }
 0x23b   :  { %v2772_v53 = vpop.f32.mrf.mxu1 }
 0x23c   :  { %v4229_v31 = vadd.f32 %v4084_v29, %v1002_v41  ;;  %v2773_v60 = vadd.f32 %v2772_v53, %v2771_v33  ;;  %3231 = vmatmul.mubr.msk.f32.gmra.mxu0 %vm133_vm0, %v5067_v43 }
 0x23d   :  { %v2774_v13 = vpop.f32.mrf.mxu1 }
 0x23e   :  { %5189 = vst [vmem:[#allocation58_spill] sm:$0xff] %v4229_v31  ;;  %v5069_v19 = vmax.f32 %v4229_v31, 0.0  ;;  %v1003_v39 = vmul.f32 %v2773_v60, %v3833_v54 }
 0x23f   :  { %v2775_v38 = vpop.f32.mrf.mxu1 }
 0x240   :  { %v4237_v36 = vadd.f32 %v4084_v29, %v1003_v39  ;;  %v2776_v56 = vadd.f32 %v2775_v38, %v2774_v13  ;;  %3233 = vmatprep.mubr.msk.f32.mxu0 %vm133_vm0, %v5069_v19 }
 0x241   :  { %v2777_v4 = vpop.f32.mrf.mxu1 }
 0x242   :  { %5190 = vst [vmem:[#allocation59_spill] sm:$0xff] %v4237_v36  ;;  %v5071_v33 = vmax.f32 %v4237_v36, 0.0  ;;  %v1004_v41 = vmul.f32 %v2776_v56, %v3812_v55 }
 0x243   :  { %v2778_v53 = vpop.f32.mrf.mxu1 }
 0x244   :  { %v4245_v43 = vadd.f32 %v4084_v29, %v1004_v41  ;;  %v2779_v18 = vadd.f32 %v2778_v53, %v2777_v4  ;;  %3234 = vmatmul.mubr.msk.f32.gmra.mxu0 %vm133_vm0, %v5071_v33 }
 0x245   :  { %v2780_v60 = vpop.f32.mrf.mxu1 }
 0x246   :  { %5191 = vst [vmem:[#allocation60_spill] sm:$0xff] %v4245_v43  ;;  %v5073_v13 = vmax.f32 %v4245_v43, 0.0  ;;  %v1005_v39 = vmul.f32 %v2779_v18, %v3814_v57 }
 0x247   :  { %v2781_v38 = vpop.f32.mrf.mxu1 }
 0x248   :  { %v4253_v19 = vadd.f32 %v4084_v29, %v1005_v39  ;;  %v2782_v31 = vadd.f32 %v2781_v38, %v2780_v60  ;;  %3236 = vmatprep.mubr.msk.f32.mxu0 %vm133_vm0, %v5073_v13 }
 0x249   :  { %v2783_v56 = vpop.f32.mrf.mxu1 }
 0x24a   :  { %5192 = vst [vmem:[#allocation61_spill] sm:$0xff] %v4253_v19  ;;  %v5075_v4 = vmax.f32 %v4253_v19, 0.0  ;;  %v1006_v41 = vmul.f32 %v2782_v31, %v3804_v45 }
 0x24b   :  { %v2784_v53 = vpop.f32.mrf.mxu1 }
 0x24c   :  { %v4261_v33 = vadd.f32 %v4084_v29, %v1006_v41  ;;  %v2785_v36 = vadd.f32 %v2784_v53, %v2783_v56  ;;  %3237 = vmatmul.mubr.msk.f32.gmra.mxu0 %vm133_vm0, %v5075_v4 }
 0x24d   :  { %v2786_v18 = vpop.f32.mrf.mxu1 }
 0x24e   :  { %5193 = vst [vmem:[#allocation62_spill] sm:$0xff] %v4261_v33  ;;  %v5077_v60 = vmax.f32 %v4261_v33, 0.0  ;;  %v1007_v39 = vmul.f32 %v2785_v36, %v3806_v47 }
 0x24f   :  { %v2787_v38 = vpop.f32.mrf.mxu1 }
 0x250   :  { %v4269_v13 = vadd.f32 %v4084_v29, %v1007_v39  ;;  %v2788_v43 = vadd.f32 %v2787_v38, %v2786_v18  ;;  %3239 = vmatprep.mubr.msk.f32.mxu0 %vm133_vm0, %v5077_v60 }
 0x251   :  { %v2789_v31 = vpop.f32.mrf.mxu1 }
 0x252   :  { %5194 = vst [vmem:[#allocation63_spill] sm:$0xff] %v4269_v13  ;;  %v5079_v56 = vmax.f32 %v4269_v13, 0.0  ;;  %v1008_v41 = vmul.f32 %v2788_v43, %v3788_v35 }
 0x253   :  { %v2790_v53 = vpop.f32.mrf.mxu1 }
 0x254   :  { %v4277_v4 = vadd.f32 %v4084_v29, %v1008_v41  ;;  %v2791_v19 = vadd.f32 %v2790_v53, %v2789_v31  ;;  %3240 = vmatmul.mubr.msk.f32.gmra.mxu0 %vm133_vm0, %v5079_v56 }
 0x255   :  { %v2792_v36 = vpop.f32.mrf.mxu1 }
 0x256   :  { %5195 = vst [vmem:[#allocation64_spill] sm:$0xff] %v4277_v4  ;;  %v5081_v18 = vmax.f32 %v4277_v4, 0.0  ;;  %v1009_v39 = vmul.f32 %v2791_v19, %v3792_v37 }
 0x257   :  { %v2793_v38 = vpop.f32.mrf.mxu1 }
 0x258   :  { %v4285_v60 = vadd.f32 %v4084_v29, %v1009_v39  ;;  %v2794_v33 = vadd.f32 %v2793_v38, %v2792_v36  ;;  %3242 = vmatprep.mubr.msk.f32.mxu0 %vm133_vm0, %v5081_v18 }
 0x259   :  { %v2795_v43 = vpop.f32.mrf.mxu1 }
 0x25a   :  { %5196 = vst [vmem:[#allocation65_spill] sm:$0xff] %v4285_v60  ;;  %v5083_v31 = vmax.f32 %v4285_v60, 0.0  ;;  %v1010_v41 = vmul.f32 %v2794_v33, %v3778_v25 }
 0x25b   :  { %v2796_v53 = vpop.f32.mrf.mxu1 }
 0x25c   :  { %v4293_v56 = vadd.f32 %v4084_v29, %v1010_v41  ;;  %v2797_v13 = vadd.f32 %v2796_v53, %v2795_v43  ;;  %3243 = vmatmul.mubr.msk.f32.gmra.mxu0 %vm133_vm0, %v5083_v31 }
 0x25d   :  { %v2798_v19 = vpop.f32.mrf.mxu1 }
 0x25e   :  { %5197 = vst [vmem:[#allocation66_spill] sm:$0xff] %v4293_v56  ;;  %v5085_v36 = vmax.f32 %v4293_v56, 0.0  ;;  %v1011_v39 = vmul.f32 %v2797_v13, %v3780_v27 }
 0x25f   :  { %v2799_v38 = vpop.f32.mrf.mxu1 }
 0x260   :  { %v4301_v18 = vadd.f32 %v4084_v29, %v1011_v39  ;;  %v2800_v4 = vadd.f32 %v2799_v38, %v2798_v19  ;;  %3245 = vmatprep.mubr.msk.f32.mxu0 %vm133_vm0, %v5085_v36 }
 0x261   :  { %v2801_v33 = vpop.f32.mrf.mxu1 }
 0x262   :  { %5198 = vst [vmem:[#allocation67_spill] sm:$0xff] %v4301_v18  ;;  %v5087_v43 = vmax.f32 %v4301_v18, 0.0  ;;  %v1012_v41 = vmul.f32 %v2800_v4, %v3760_v15 }
 0x263   :  { %v2802_v53 = vpop.f32.mrf.mxu1 }
 0x264   :  { %v4309_v31 = vadd.f32 %v4084_v29, %v1012_v41  ;;  %v2803_v60 = vadd.f32 %v2802_v53, %v2801_v33  ;;  %3246 = vmatmul.mubr.msk.f32.gmra.mxu0 %vm133_vm0, %v5087_v43 }
 0x265   :  { %v2804_v13 = vpop.f32.mrf.mxu1 }
 0x266   :  { %5199 = vst [vmem:[#allocation68_spill] sm:$0xff] %v4309_v31  ;;  %v5091_v19 = vmax.f32 %v4309_v31, 0.0  ;;  %v1013_v39 = vmul.f32 %v2803_v60, %v3764_v17 }
 0x267   :  { %v2805_v38 = vpop.f32.mrf.mxu1 }
 0x268   :  { %v4317_v36 = vadd.f32 %v4084_v29, %v1013_v39  ;;  %v2806_v56 = vadd.f32 %v2805_v38, %v2804_v13  ;;  %3248 = vmatprep.mubr.msk.f32.mxu0 %vm133_vm0, %v5091_v19  ;;  %v5202_v13 = vld [vmem:[#allocation5_spill] sm:$0xff] }
 0x269   :  { %v2807_v4 = vpop.f32.mrf.mxu1 }
 0x26a   :  { %5200 = vst [vmem:[#allocation69_spill] sm:$0xff] %v4317_v36  ;;  %v5089_v33 = vmax.f32 %v4317_v36, 0.0  ;;  %v1014_v41 = vmul.f32 %v2806_v56, %v3742_v6 }
 0x26b   :  { %v2808_v53 = vpop.f32.mrf.mxu1 }
 0x26c   :  { %v4325_v43 = vadd.f32 %v4084_v29, %v1014_v41  ;;  %v2809_v18 = vadd.f32 %v2808_v53, %v2807_v4  ;;  %3249 = vmatmul.mubr.msk.f32.gmra.mxu0 %vm133_vm0, %v5089_v33  ;;  %v5204_v4 = vld [vmem:[#allocation2_spill] sm:$0xff] }
 0x26e   :  { %5201 = vst [vmem:[#allocation70_spill] sm:$0xff] %v4325_v43  ;;  %v5090_v60 = vmax.f32 %v4325_v43, 0.0  ;;  %v1015_v39 = vmul.f32 %v2809_v18, %v5202_v13 }
 0x270   :  { %v4333_v38 = vadd.f32 %v4084_v29, %v1015_v39  ;;  %3251 = vmatprep.mubr.msk.f32.mxu0 %vm133_vm0, %v5090_v60 }
 0x272   :  { %5203 = vst [vmem:[#allocation5_spill] sm:$0xff] %v4333_v38  ;;  %v5093_v56 = vmax.f32 %v4333_v38, 0.0 }
 0x274   :  { %3252 = vmatmul.mubr.msk.f32.gmra.mxu0 %vm133_vm0, %v5093_v56 }
 0x275   :  { %1492 = vmatprep.mubr.bf16.mxu0 %v5204_v4 }
 0x2bc   :  { %v3208_v41 = vpop.f32.mrf.mxu0 }
 0x2bd   :  { %v4344_v33 = vmul.f32 %v3208_v41, %v3875_v14 }
 0x2be   :  { %v1253_v53 = vpop.f32.mrf.mxu0 }
 0x2bf   :  { %5205 = vst [vmem:[#allocation2_spill] sm:$0xff] %v4344_v33  ;;  %v4347_v29 = vmul.f32 %v1253_v53, %v3869_v16 }
 0x2c1   :  { %5206 = vst [vmem:[#allocation71_spill] sm:$0xff] %v4347_v29 }
 0x2c4   :  { %v4351_v39 = vpop.f32.mrf.mxu0 }
 0x2c5   :  { %5207 = vst [vmem:[#allocation72_spill] sm:$0xff] %v4351_v39 }
 0x2c6   :  { %v4353_v60 = vpop.f32.mrf.mxu0 }
 0x2cc   :  { %v3214_v19 = vpop.f32.mrf.mxu0 }
 0x2cd   :  { %v4356_v56 = vmul.f32 %v3214_v19, %v3823_v2 }
 0x2ce   :  { %v1273_v38 = vpop.f32.mrf.mxu0 }
 0x2cf   :  { %5208 = vst [vmem:[#allocation73_spill] sm:$0xff] %v4356_v56  ;;  %v4359_v4 = vmul.f32 %v1273_v38, %v3817_v61 }
 0x2d1   :  { %5209 = vst [vmem:[#allocation74_spill] sm:$0xff] %v4359_v4 }
 0x2d4   :  { %v3217_v53 = vpop.f32.mrf.mxu0 }
 0x2d6   :  { %v1283_v43 = vpop.f32.mrf.mxu0 }
 0x2dc   :  { %v3220_v36 = vpop.f32.mrf.mxu0 }
 0x2de   :  { %v1293_v31 = vpop.f32.mrf.mxu0 }
 0x2e4   :  { %v3223_v18 = vpop.f32.mrf.mxu0 }
 0x2e6   :  { %v1303_v14 = vpop.f32.mrf.mxu0 }
 0x2ec   :  { %v3226_v16 = vpop.f32.mrf.mxu0 }
 0x2ee   :  { %v1313_v1 = vpop.f32.mrf.mxu0 }
 0x2ef   :  { %v1424_v3 = vmul.f32 %v1313_v1, %v3770_v20 }
 0x2f4   :  { %v3229_v44 = vpop.f32.mrf.mxu0 }
 0x2f5   :  { %v1427_v29 = vmul.f32 %v3229_v44, %v3754_v12 }
 0x2f6   :  { %v1323_v21 = vpop.f32.mrf.mxu0 }
 0x2f7   :  { %v1426_v8 = vmul.f32 %v1323_v21, %v5184_v59  ;;  %v1425_v21 = vmul.f32 %v3226_v16, %v3774_v22 }
 0x2f9   :  { %v1451_v4 = vpack.c.bf16 %v1427_v29, %v1426_v8 }
 0x2fc   :  { %v4363_v46 = vpop.f32.mrf.mxu0 }
 0x2fd   :  { %5210 = vst [vmem:[#allocation75_spill] sm:$0xff] %v4363_v46 }
 0x2fe   :  { %v1333_v19 = vpop.f32.mrf.mxu0 }
 0x304   :  { %v3235_v2 = vpop.f32.mrf.mxu0 }
 0x306   :  { %v1343_v63 = vpop.f32.mrf.mxu0 }
 0x30c   :  { %v3238_v38 = vpop.f32.mrf.mxu0 }
 0x30e   :  { %v1353_v61 = vpop.f32.mrf.mxu0 }
 0x314   :  { %v3241_v23 = vpop.f32.mrf.mxu0 }
 0x316   :  { %v1363_v48 = vpop.f32.mrf.mxu0 }
 0x317   :  { %v1434_v16 = vmul.f32 %v1363_v48, %v3804_v45 }
 0x31c   :  { %v3244_v41 = vpop.f32.mrf.mxu0 }
 0x31e   :  { %v1373_v24 = vpop.f32.mrf.mxu0 }
 0x31f   :  { %v1436_v44 = vmul.f32 %v1373_v24, %v3788_v35 }
 0x324   :  { %v3247_v10 = vpop.f32.mrf.mxu0 }
 0x326   :  { %v1383_v26 = vpop.f32.mrf.mxu0 }
 0x327   :  { %v1438_v56 = vmul.f32 %v1383_v26, %v3778_v25 }
 0x32c   :  { %v3250_v5 = vpop.f32.mrf.mxu0 }
 0x32d   :  { %v1441_v33 = vmul.f32 %v3250_v5, %v3764_v17 }
 0x32e   :  { %v1393_v7 = vpop.f32.mrf.mxu0 }
 0x32f   :  { %v1440_v9 = vmul.f32 %v1393_v7, %v3760_v15  ;;  %v1439_v7 = vmul.f32 %v3247_v10, %v3780_v27  ;;  %v1421_v10 = vmul.f32 %v3220_v36, %v3802_v42 }
 0x331   :  { %v1458_v39 = vpack.c.bf16 %v1441_v33, %v1440_v9  ;;  %v1457_v5 = vpack.c.bf16 %v1439_v7, %v1438_v56  ;;  %v1420_v9 = vmul.f32 %v1293_v31, %v3798_v40  ;;  %v1419_v33 = vmul.f32 %v3217_v53, %v3810_v52 }
 0x332   :  { %v1433_v31 = vmul.f32 %v3238_v38, %v3814_v57  ;;  %v1430_v56 = vmul.f32 %v1343_v63, %v3829_v58  ;;  %v5215_v38 = vld [vmem:[#allocation8_spill] sm:$0xff]  ;;  %v5216_v63 = vld [vmem:[#allocation75_spill] sm:$0xff] }
 0x333   :  { %v1448_v24 = vpack.c.bf16 %v1421_v10, %v1420_v9  ;;  %v5225_v9 = vld [vmem:[#allocation15_spill] sm:$0xff] }
 0x334   :  { %v3253_v28 = vpop.f32.mrf.mxu0  ;;  %v5229_v10 = vld [vmem:[#allocation19_spill] sm:$0xff] }
 0x335   :  { %v1443_v34 = vmul.f32 %v3253_v28, %v5202_v13  ;;  %v1450_v28 = vpack.c.bf16 %v1425_v21, %v1424_v3  ;;  %v1435_v3 = vmul.f32 %v3241_v23, %v3806_v47  ;;  %v1431_v23 = vmul.f32 %v3235_v2, %v3833_v54 }
 0x336   :  { %v1403_v62 = vpop.f32.mrf.mxu0  ;;  %v1429_v21 = vmul.f32 %v5216_v63, %v5215_v38  ;;  %v5245_v63 = vld [vmem:[#allocation35_spill] sm:$0xff] }
 0x337   :  { %v1442_v11 = vmul.f32 %v1403_v62, %v3742_v6  ;;  %v1422_v62 = vmul.f32 %v1303_v14, %v3782_v30  ;;  %v1418_v14 = vmul.f32 %v1283_v43, %v3808_v50  ;;  %v1455_v1 = vpack.c.bf16 %v1435_v3, %v1434_v16  ;;  %v5227_v16 = vld [vmem:[#allocation17_spill] sm:$0xff]  ;;  %v5230_v3 = vld [vmem:[#allocation20_spill] sm:$0xff] }
 0x338   :  { %v1414_v43 = vmul.f32 %v4353_v60, %v3840_v51  ;;  %v1453_v29 = vpack.c.bf16 %v1431_v23, %v1430_v56  ;;  %v5218_v60 = vld [vmem:[#allocation71_spill] sm:$0xff]  ;;  %v1731_v56 = vld [vmem:[%s5011_s7 + $0x38] sm:$0xff]  ;;  %v1730_v23 = vld [vmem:[%s5011_s7 + $0x30] sm:$0xff] }
 0x339   :  { %v1459_v46 = vpack.c.bf16 %v1443_v34, %v1442_v11  ;;  %v1423_v11 = vmul.f32 %v3223_v18, %v3784_v32  ;;  %v1437_v34 = vmul.f32 %v3244_v41, %v3792_v37  ;;  %v1447_v48 = vpack.c.bf16 %v1419_v33, %v1418_v14  ;;  %v5211_v18 = vld [vmem:[#allocation72_spill] sm:$0xff]  ;;  %v5213_v41 = vld [vmem:[#allocation74_spill] sm:$0xff]  ;;  %v5231_v14 = vld [vmem:[#allocation21_spill] sm:$0xff]  ;;  %3254 = vmatprep.subr.mxu1 %v1731_v56 }
 0x33a   :  { %v5235_v33 = vld [vmem:[#allocation25_spill] sm:$0xff]  ;;  %3255 = vmatpush3.msra.mxu1 %v1731_v56 }
 0x33b   :  { %2846 = vmatprep.subr.bf16.mxu0 %v1459_v46  ;;  %v1449_v8 = vpack.c.bf16 %v1423_v11, %v1422_v62  ;;  %v1456_v26 = vpack.c.bf16 %v1437_v34, %v1436_v44  ;;  %v1432_v46 = vmul.f32 %v1353_v61, %v3812_v55  ;;  %v1428_v61 = vmul.f32 %v1333_v19, %v3853_v0  ;;  %v5217_v62 = vld [vmem:[#allocation2_spill] sm:$0xff]  ;;  %v5220_v19 = vld [vmem:[#allocation4_spill] sm:$0xff]  ;;  %v5221_v44 = vld [vmem:[#allocation11_spill] sm:$0xff] }
 0x33c   :  { %2847 = vmatpush3.bf16.msra.mxu0 %v1451_v4  ;;  %v5212_v4 = vld [vmem:[#allocation73_spill] sm:$0xff]  ;;  %v5224_v34 = vld [vmem:[#allocation14_spill] sm:$0xff]  ;;  %3256 = vmatprep.subr.mxu1 %v1730_v23 }
 0x33d   :  { %2848 = vmatprep.subr.bf16.mxu0 %v1458_v39  ;;  %v1454_v36 = vpack.c.bf16 %v1433_v31, %v1432_v46  ;;  %v1415_v39 = vmul.f32 %v5211_v18, %v3845_v49  ;;  %v5214_v53 = vpack.c.bf16 %v5212_v4, %v5213_v41  ;;  %v1452_v2 = vpack.c.bf16 %v1429_v21, %v1428_v61  ;;  %v5223_v11 = vld [vmem:[#allocation13_spill] sm:$0xff]  ;;  %v5233_v46 = vld [vmem:[#allocation23_spill] sm:$0xff]  ;;  %v5236_v31 = vld [vmem:[#allocation26_spill] sm:$0xff] }
 0x33e   :  { %3257 = vmatpush3.msra.mxu1 %v1730_v23  ;;  %v1729_v61 = vld [vmem:[%s5011_s7 + $0x28] sm:$0xff]  ;;  %v5240_v18 = vld [vmem:[#allocation30_spill] sm:$0xff]  ;;  %v5242_v4 = vld [vmem:[#allocation32_spill] sm:$0xff] }
 0x33f   :  { %v1445_v7 = vpack.c.bf16 %v1415_v39, %v1414_v43  ;;  %v5239_v43 = vld [vmem:[#allocation29_spill] sm:$0xff]  ;;  %3258 = vmatprep.subr.mxu1 %v1729_v61  ;;  %v5241_v39 = vld [vmem:[#allocation31_spill] sm:$0xff]  ;;  %v5246_v21 = vld [vmem:[#allocation36_spill] sm:$0xff] }
 0x340   :  { %2849 = vmatpush3.bf16.msra.mxu0 %v1450_v28  ;;  %v5219_v28 = vpack.c.bf16 %v5217_v62, %v5218_v60  ;;  %3259 = vmatpush3.msra.mxu1 %v1729_v61  ;;  %v5243_v41 = vld [vmem:[#allocation33_spill] sm:$0xff]  ;;  %v5249_v62 = vld [vmem:[#allocation39_spill] sm:$0xff]  ;;  %v5250_v60 = vld [vmem:[#allocation40_spill] sm:$0xff] }
 0x341   :  { %2850 = vmatprep.subr.bf16.mxu0 %v1457_v5  ;;  %v5222_v5 = vld [vmem:[#allocation12_spill] sm:$0xff] }
 0x342   :  { %v1726_v61 = vld [vmem:[%s5011_s7 + $0x10] sm:$0xff] }
 0x344   :  { %2851 = vmatpush3.bf16.msra.mxu0 %v1449_v8  ;;  %v5226_v8 = vld [vmem:[#allocation16_spill] sm:$0xff] }
 0x345   :  { %2852 = vmatprep.subr.bf16.mxu0 %v1456_v26  ;;  %v5228_v26 = vld [vmem:[#allocation18_spill] sm:$0xff] }
 0x348   :  { %2853 = vmatpush3.bf16.msra.mxu0 %v1448_v24  ;;  %v5232_v24 = vld [vmem:[#allocation22_spill] sm:$0xff] }
 0x349   :  { %2854 = vmatprep.subr.bf16.mxu0 %v1455_v1  ;;  %v5234_v1 = vld [vmem:[#allocation24_spill] sm:$0xff] }
 0x34c   :  { %2855 = vmatpush3.bf16.msra.mxu0 %v1447_v48  ;;  %v5237_v48 = vld [vmem:[#allocation27_spill] sm:$0xff] }
 0x34d   :  { %2856 = vmatprep.subr.bf16.mxu0 %v1454_v36  ;;  %v5238_v36 = vld [vmem:[#allocation28_spill] sm:$0xff] }
 0x350   :  { %2857 = vmatpush3.bf16.msra.mxu0 %v5214_v53  ;;  %v5244_v53 = vld [vmem:[#allocation34_spill] sm:$0xff] }
 0x351   :  { %2858 = vmatprep.subr.bf16.mxu0 %v1453_v29  ;;  %v1728_v29 = vld [vmem:[%s5011_s7 + $0x20] sm:$0xff] }
 0x352   :  { %3260 = vmatprep.subr.mxu1 %v1728_v29 }
 0x353   :  { %3261 = vmatpush3.msra.mxu1 %v1728_v29 }
 0x354   :  { %2859 = vmatpush3.bf16.msra.mxu0 %v1445_v7  ;;  %v5247_v7 = vld [vmem:[#allocation37_spill] sm:$0xff] }
 0x355   :  { %2860 = vmatprep.subr.bf16.mxu0 %v1452_v2  ;;  %v5248_v2 = vld [vmem:[#allocation38_spill] sm:$0xff] }
 0x358   :  { %2861 = vmatpush3.bf16.msra.mxu0 %v5219_v28  ;;  %v3417_v28 = vld [vmem:[%s5008_s0 + $0x4] ss:$8 sps:$4 sm:$0xff]  }
 0x35b   :  { %1493 = vmatmul.mubr.bf16.vlgmr.msra.gmra.mxu0 %v5220_v19 }
 0x35c   :  { %1500 = vmatprep.mubr.bf16.mxu0 %v5221_v44 }
 0x363   :  { %1501 = vmatmul.mubr.bf16.gmra.mxu0 %v5222_v5  ;;  %v1727_v5 = vld [vmem:[%s5011_s7 + $0x18] sm:$0xff] }
 0x364   :  { %1508 = vmatprep.mubr.bf16.mxu0 %v5223_v11  ;;  %3310 = vmatprep.subr.mxu1 %v1727_v5 }
 0x36b   :  { %1509 = vmatmul.mubr.bf16.gmra.mxu0 %v5224_v34  ;;  %v4454_v34 = vld [vmem:[%s5012_s6] ss:$0 sm:$0xff] }
 0x36c   :  { %1516 = vmatprep.mubr.bf16.mxu0 %v5225_v9 }
 0x373   :  { %1517 = vmatmul.mubr.bf16.gmra.mxu0 %v5226_v8  ;;  %v5251_v8 = vld [vmem:[#allocation9_spill] sm:$0xff] }
 0x374   :  { %1524 = vmatprep.mubr.bf16.mxu0 %v5227_v16 }
 0x37b   :  { %1525 = vmatmul.mubr.bf16.gmra.mxu0 %v5228_v26 }
 0x37c   :  { %1532 = vmatprep.mubr.bf16.mxu0 %v5229_v10 }
 0x383   :  { %1533 = vmatmul.mubr.bf16.gmra.mxu0 %v5230_v3 }
 0x384   :  { %1540 = vmatprep.mubr.bf16.mxu0 %v5231_v14 }
 0x38b   :  { %1541 = vmatmul.mubr.bf16.gmra.mxu0 %v5232_v24 }
 0x38c   :  { %1548 = vmatprep.mubr.bf16.mxu0 %v5233_v46  ;;  %v5252_v46 = vld [vmem:[#allocation10_spill] sm:$0xff] }
 0x393   :  { %1549 = vmatmul.mubr.bf16.gmra.mxu0 %v5234_v1 }
 0x394   :  { %1556 = vmatprep.mubr.bf16.mxu0 %v5235_v33 }
 0x39b   :  { %1557 = vmatmul.mubr.bf16.gmra.mxu0 %v5236_v31 }
 0x39c   :  { %1564 = vmatprep.mubr.bf16.mxu0 %v5237_v48 }
 0x3a3   :  { %1565 = vmatmul.mubr.bf16.gmra.mxu0 %v5238_v36 }
 0x3a4   :  { %1572 = vmatprep.mubr.bf16.mxu0 %v5239_v43 }
 0x3ab   :  { %1573 = vmatmul.mubr.bf16.gmra.mxu0 %v5240_v18 }
 0x3ac   :  { %1580 = vmatprep.mubr.bf16.mxu0 %v5241_v39 }
 0x3b3   :  { %1581 = vmatmul.mubr.bf16.gmra.mxu0 %v5242_v4  ;;  %v1725_v4 = vld [vmem:[%s5011_s7 + $0x8] sm:$0xff] }
 0x3b4   :  { %1588 = vmatprep.mubr.bf16.mxu0 %v5243_v41 }
 0x3bb   :  { %1589 = vmatmul.mubr.bf16.gmra.mxu0 %v5244_v53 }
 0x3bc   :  { %1596 = vmatprep.mubr.bf16.mxu0 %v5245_v63  ;;  %v1724_v63 = vld [vmem:[%s5011_s7] sm:$0xff] }
 0x3c3   :  { %1597 = vmatmul.mubr.bf16.gmra.mxu0 %v5246_v21 }
 0x3c4   :  { %1604 = vmatprep.mubr.bf16.mxu0 %v5247_v7 }
 0x3cb   :  { %1605 = vmatmul.mubr.bf16.gmra.mxu0 %v5248_v2 }
 0x3cc   :  { %1612 = vmatprep.mubr.bf16.mxu0 %v5249_v62 }
 0x3d3   :  { %1613 = vmatmul.mubr.bf16.gmra.mxu0 %v5250_v60  ;;  %v5253_v60 = vld [vmem:[#allocation6_spill] sm:$0xff] }
 0x3d4   :  { %2333 = vmatprep.mubr.bf16.mxu0 %v3417_v28 }
 0x41b   :  { %v2862_v19 = vpop.f32.mrf.mxu0 }
 0x41d   :  { %v2863_v44 = vpop.f32.mrf.mxu0 }
 0x41e   :  { %v2864_v11 = vadd.f32 %v2863_v44, %v2862_v19 }
 0x41f   :  { %v2865_v9 = vpop.f32.mrf.mxu0 }
 0x420   :  { %v1621_v16 = vmul.f32 %v2864_v11, %v5251_v8 }
 0x421   :  { %v2866_v26 = vpop.f32.mrf.mxu0 }
 0x422   :  { %v1660_v10 = vadd.f32 %v4454_v34, %v1621_v16  ;;  %v2867_v3 = vadd.f32 %v2866_v26, %v2865_v9  ;;  %v5254_v9 = vld [vmem:[#allocation7_spill] sm:$0xff] }
 0x423   :  { %v2868_v14 = vpop.f32.mrf.mxu0 }
 0x424   :  { %v1692_v24 = vmax.f32 %v1660_v10, 0.0  ;;  %v1622_v1 = vmul.f32 %v2867_v3, %v5252_v46 }
 0x425   :  { %v2869_v33 = vpop.f32.mrf.mxu0 }
 0x426   :  { %v1661_v31 = vadd.f32 %v4454_v34, %v1622_v1  ;;  %v2870_v48 = vadd.f32 %v2869_v33, %v2868_v14  ;;  %3262 = vmatprep.mubr.msk.f32.mxu1 %vm133_vm0, %v1692_v24 }
 0x427   :  { %v2871_v56 = vpop.f32.mrf.mxu0 }
 0x428   :  { %v1693_v36 = vmax.f32 %v1661_v31, 0.0  ;;  %v1623_v23 = vmul.f32 %v2870_v48, %v3840_v51 }
 0x429   :  { %v2872_v43 = vpop.f32.mrf.mxu0 }
 0x42a   :  { %v1662_v29 = vadd.f32 %v4454_v34, %v1623_v23  ;;  %v2873_v18 = vadd.f32 %v2872_v43, %v2871_v56  ;;  %3263 = vmatmul.mubr.msk.f32.vlgmr.msra.gmra.mxu1 %vm133_vm0, %v1693_v36 }
 0x42b   :  { %v2874_v39 = vpop.f32.mrf.mxu0  ;;  %3311 = vmatpush3.msra.mxu1 %v1727_v5 }
 0x42c   :  { %v1694_v41 = vmax.f32 %v1662_v29, 0.0  ;;  %v1624_v53 = vmul.f32 %v2873_v18, %v3845_v49  ;;  %3312 = vmatprep.subr.mxu1 %v1726_v61 }
 0x42d   :  { %v2875_v51 = vpop.f32.mrf.mxu0  ;;  %3313 = vmatpush3.msra.mxu1 %v1726_v61 }
 0x42e   :  { %v1663_v21 = vadd.f32 %v4454_v34, %v1624_v53  ;;  %v2876_v7 = vadd.f32 %v2875_v51, %v2874_v39  ;;  %3265 = vmatprep.mubr.msk.f32.mxu1 %vm133_vm0, %v1694_v41  ;;  %3314 = vmatprep.subr.mxu1 %v1725_v4 }
 0x42f   :  { %v2877_v2 = vpop.f32.mrf.mxu0  ;;  %3315 = vmatpush3.msra.mxu1 %v1725_v4 }
 0x430   :  { %v1695_v62 = vmax.f32 %v1663_v21, 0.0  ;;  %v1625_v28 = vmul.f32 %v2876_v7, %v5253_v60  ;;  %3316 = vmatprep.subr.mxu1 %v1724_v63 }
 0x431   :  { %v2878_v49 = vpop.f32.mrf.mxu0  ;;  %3317 = vmatpush3.msra.mxu1 %v1724_v63 }
 0x432   :  { %v1664_v19 = vadd.f32 %v4454_v34, %v1625_v28  ;;  %v2879_v44 = vadd.f32 %v2878_v49, %v2877_v2  ;;  %3266 = vmatmul.mubr.msk.f32.gmra.mxu1 %vm133_vm0, %v1695_v62 }
 0x433   :  { %v2880_v5 = vpop.f32.mrf.mxu0 }
 0x434   :  { %v1696_v11 = vmax.f32 %v1664_v19, 0.0  ;;  %v1626_v8 = vmul.f32 %v2879_v44, %v5254_v9 }
 0x435   :  { %v2881_v16 = vpop.f32.mrf.mxu0 }
 0x436   :  { %v1665_v26 = vadd.f32 %v4454_v34, %v1626_v8  ;;  %v2882_v10 = vadd.f32 %v2881_v16, %v2880_v5  ;;  %3268 = vmatprep.mubr.msk.f32.mxu1 %vm133_vm0, %v1696_v11 }
 0x437   :  { %v2883_v3 = vpop.f32.mrf.mxu0 }
 0x438   :  { %v1697_v14 = vmax.f32 %v1665_v26, 0.0  ;;  %v1627_v24 = vmul.f32 %v2882_v10, %v3808_v50 }
 0x439   :  { %v2884_v46 = vpop.f32.mrf.mxu0 }
 0x43a   :  { %v1666_v1 = vadd.f32 %v4454_v34, %v1627_v24  ;;  %v2885_v33 = vadd.f32 %v2884_v46, %v2883_v3  ;;  %3269 = vmatmul.mubr.msk.f32.gmra.mxu1 %vm133_vm0, %v1697_v14 }
 0x43b   :  { %v2886_v31 = vpop.f32.mrf.mxu0 }
 0x43c   :  { %v1698_v48 = vmax.f32 %v1666_v1, 0.0  ;;  %v1628_v56 = vmul.f32 %v2885_v33, %v3810_v52 }
 0x43d   :  { %v2887_v36 = vpop.f32.mrf.mxu0 }
 0x43e   :  { %v1667_v23 = vadd.f32 %v4454_v34, %v1628_v56  ;;  %v2888_v43 = vadd.f32 %v2887_v36, %v2886_v31  ;;  %3271 = vmatprep.mubr.msk.f32.mxu1 %vm133_vm0, %v1698_v48 }
 0x43f   :  { %v2889_v61 = vpop.f32.mrf.mxu0 }
 0x440   :  { %v1699_v29 = vmax.f32 %v1667_v23, 0.0  ;;  %v1629_v50 = vmul.f32 %v2888_v43, %v3798_v40 }
 0x441   :  { %v2890_v18 = vpop.f32.mrf.mxu0 }
 0x442   :  { %v1668_v39 = vadd.f32 %v4454_v34, %v1629_v50  ;;  %v2891_v4 = vadd.f32 %v2890_v18, %v2889_v61  ;;  %3272 = vmatmul.mubr.msk.f32.gmra.mxu1 %vm133_vm0, %v1699_v29 }
 0x443   :  { %v2892_v41 = vpop.f32.mrf.mxu0 }
 0x444   :  { %v1700_v53 = vmax.f32 %v1668_v39, 0.0  ;;  %v1630_v52 = vmul.f32 %v2891_v4, %v3802_v42 }
 0x445   :  { %v2893_v51 = vpop.f32.mrf.mxu0 }
 0x446   :  { %v1669_v63 = vadd.f32 %v4454_v34, %v1630_v52  ;;  %v2894_v21 = vadd.f32 %v2893_v51, %v2892_v41  ;;  %3274 = vmatprep.mubr.msk.f32.mxu1 %vm133_vm0, %v1700_v53 }
 0x447   :  { %v2895_v7 = vpop.f32.mrf.mxu0 }
 0x448   :  { %v1701_v2 = vmax.f32 %v1669_v63, 0.0  ;;  %v1631_v40 = vmul.f32 %v2894_v21, %v3782_v30 }
 0x449   :  { %v2896_v62 = vpop.f32.mrf.mxu0 }
 0x44a   :  { %v1670_v60 = vadd.f32 %v4454_v34, %v1631_v40  ;;  %v2897_v28 = vadd.f32 %v2896_v62, %v2895_v7  ;;  %3275 = vmatmul.mubr.msk.f32.gmra.mxu1 %vm133_vm0, %v1701_v2 }
 0x44b   :  { %v2898_v49 = vpop.f32.mrf.mxu0 }
 0x44c   :  { %v1702_v19 = vmax.f32 %v1670_v60, 0.0  ;;  %v1632_v42 = vmul.f32 %v2897_v28, %v3784_v32 }
 0x44d   :  { %v2899_v44 = vpop.f32.mrf.mxu0 }
 0x44e   :  { %v1671_v5 = vadd.f32 %v4454_v34, %v1632_v42  ;;  %v2900_v11 = vadd.f32 %v2899_v44, %v2898_v49  ;;  %3277 = vmatprep.mubr.msk.f32.mxu1 %vm133_vm0, %v1702_v19 }
 0x44f   :  { %v2901_v9 = vpop.f32.mrf.mxu0 }
 0x450   :  { %v1703_v8 = vmax.f32 %v1671_v5, 0.0  ;;  %v1633_v30 = vmul.f32 %v2900_v11, %v3770_v20 }
 0x451   :  { %v2902_v16 = vpop.f32.mrf.mxu0 }
 0x452   :  { %v1672_v26 = vadd.f32 %v4454_v34, %v1633_v30  ;;  %v2903_v10 = vadd.f32 %v2902_v16, %v2901_v9  ;;  %3278 = vmatmul.mubr.msk.f32.gmra.mxu1 %vm133_vm0, %v1703_v8 }
 0x453   :  { %v2904_v3 = vpop.f32.mrf.mxu0 }
 0x454   :  { %v1704_v14 = vmax.f32 %v1672_v26, 0.0  ;;  %v1634_v32 = vmul.f32 %v2903_v10, %v3774_v22 }
 0x455   :  { %v2905_v24 = vpop.f32.mrf.mxu0 }
 0x456   :  { %v1673_v46 = vadd.f32 %v4454_v34, %v1634_v32  ;;  %v2906_v1 = vadd.f32 %v2905_v24, %v2904_v3  ;;  %3280 = vmatprep.mubr.msk.f32.mxu1 %vm133_vm0, %v1704_v14 }
 0x457   :  { %v2907_v33 = vpop.f32.mrf.mxu0 }
 0x458   :  { %v1705_v31 = vmax.f32 %v1673_v46, 0.0  ;;  %v1635_v20 = vmul.f32 %v2906_v1, %v5184_v59 }
 0x459   :  { %v2908_v48 = vpop.f32.mrf.mxu0 }
 0x45a   :  { %v1674_v56 = vadd.f32 %v4454_v34, %v1635_v20  ;;  %v2909_v36 = vadd.f32 %v2908_v48, %v2907_v33  ;;  %3281 = vmatmul.mubr.msk.f32.gmra.mxu1 %vm133_vm0, %v1705_v31 }
 0x45b   :  { %v2910_v23 = vpop.f32.mrf.mxu0 }
 0x45c   :  { %v1706_v43 = vmax.f32 %v1674_v56, 0.0  ;;  %v1636_v22 = vmul.f32 %v2909_v36, %v3754_v12 }
 0x45d   :  { %v2911_v61 = vpop.f32.mrf.mxu0 }
 0x45e   :  { %v1675_v29 = vadd.f32 %v4454_v34, %v1636_v22  ;;  %v2912_v50 = vadd.f32 %v2911_v61, %v2910_v23  ;;  %3283 = vmatprep.mubr.msk.f32.mxu1 %vm133_vm0, %v1706_v43 }
 0x45f   :  { %v2913_v18 = vpop.f32.mrf.mxu0 }
 0x460   :  { %v1707_v39 = vmax.f32 %v1675_v29, 0.0  ;;  %v1637_v59 = vmul.f32 %v2912_v50, %v3853_v0 }
 0x461   :  { %v2914_v4 = vpop.f32.mrf.mxu0 }
 0x462   :  { %v1676_v41 = vadd.f32 %v4454_v34, %v1637_v59  ;;  %v2915_v53 = vadd.f32 %v2914_v4, %v2913_v18  ;;  %3284 = vmatmul.mubr.msk.f32.gmra.mxu1 %vm133_vm0, %v1707_v39 }
 0x463   :  { %v2916_v52 = vpop.f32.mrf.mxu0 }
 0x464   :  { %v1708_v51 = vmax.f32 %v1676_v41, 0.0  ;;  %v1638_v12 = vmul.f32 %v2915_v53, %v5215_v38 }
 0x465   :  { %v2917_v63 = vpop.f32.mrf.mxu0 }
 0x466   :  { %v1677_v21 = vadd.f32 %v4454_v34, %v1638_v12  ;;  %v2918_v7 = vadd.f32 %v2917_v63, %v2916_v52  ;;  %3286 = vmatprep.mubr.msk.f32.mxu1 %vm133_vm0, %v1708_v51 }
 0x467   :  { %v2919_v2 = vpop.f32.mrf.mxu0 }
 0x468   :  { %v1709_v40 = vmax.f32 %v1677_v21, 0.0  ;;  %v1639_v0 = vmul.f32 %v2918_v7, %v3829_v58 }
 0x469   :  { %v2920_v62 = vpop.f32.mrf.mxu0 }
 0x46a   :  { %v1678_v60 = vadd.f32 %v4454_v34, %v1639_v0  ;;  %v2921_v28 = vadd.f32 %v2920_v62, %v2919_v2  ;;  %3287 = vmatmul.mubr.msk.f32.gmra.mxu1 %vm133_vm0, %v1709_v40 }
 0x46b   :  { %v2922_v49 = vpop.f32.mrf.mxu0 }
 0x46c   :  { %v1710_v19 = vmax.f32 %v1678_v60, 0.0  ;;  %v1640_v38 = vmul.f32 %v2921_v28, %v3833_v54 }
 0x46d   :  { %v2923_v42 = vpop.f32.mrf.mxu0 }
 0x46e   :  { %v1679_v44 = vadd.f32 %v4454_v34, %v1640_v38  ;;  %v2924_v5 = vadd.f32 %v2923_v42, %v2922_v49  ;;  %3289 = vmatprep.mubr.msk.f32.mxu1 %vm133_vm0, %v1710_v19 }
 0x46f   :  { %v2925_v11 = vpop.f32.mrf.mxu0 }
 0x470   :  { %v1711_v9 = vmax.f32 %v1679_v44, 0.0  ;;  %v1641_v58 = vmul.f32 %v2924_v5, %v3812_v55 }
 0x471   :  { %v2926_v8 = vpop.f32.mrf.mxu0 }
 0x472   :  { %v1680_v30 = vadd.f32 %v4454_v34, %v1641_v58  ;;  %v2927_v16 = vadd.f32 %v2926_v8, %v2925_v11  ;;  %3290 = vmatmul.mubr.msk.f32.gmra.mxu1 %vm133_vm0, %v1711_v9 }
 0x473   :  { %v2928_v26 = vpop.f32.mrf.mxu0 }
 0x474   :  { %v1712_v10 = vmax.f32 %v1680_v30, 0.0  ;;  %v1642_v54 = vmul.f32 %v2927_v16, %v3814_v57 }
 0x475   :  { %v2929_v3 = vpop.f32.mrf.mxu0 }
 0x476   :  { %v1681_v14 = vadd.f32 %v4454_v34, %v1642_v54  ;;  %v2930_v32 = vadd.f32 %v2929_v3, %v2928_v26  ;;  %3292 = vmatprep.mubr.msk.f32.mxu1 %vm133_vm0, %v1712_v10  ;;  %v5255_v3 = vld [vmem:[#allocation41_spill] sm:$0xff] }
 0x477   :  { %v2931_v24 = vpop.f32.mrf.mxu0 }
 0x478   :  { %v1713_v46 = vmax.f32 %v1681_v14, 0.0  ;;  %v1643_v55 = vmul.f32 %v2930_v32, %v3804_v45  ;;  %v5256_v14 = vmax.f32 %v5255_v3, 0.0 }
 0x479   :  { %v2932_v1 = vpop.f32.mrf.mxu0 }
 0x47a   :  { %v1682_v33 = vadd.f32 %v4454_v34, %v1643_v55  ;;  %v2933_v31 = vadd.f32 %v2932_v1, %v2931_v24  ;;  %3293 = vmatmul.mubr.msk.f32.gmra.mxu1 %vm133_vm0, %v1713_v46  ;;  %v5259_v24 = vld [vmem:[#allocation43_spill] sm:$0xff] }
 0x47b   :  { %v2934_v20 = vpop.f32.mrf.mxu0  ;;  %v5260_v46 = vmax.f32 %v5259_v24, 0.0 }
 0x47c   :  { %v1714_v48 = vmax.f32 %v1682_v33, 0.0  ;;  %v1644_v57 = vmul.f32 %v2933_v31, %v3806_v47  ;;  %v5265_v33 = vld [vmem:[#allocation46_spill] sm:$0xff] }
 0x47d   :  { %v2935_v56 = vpop.f32.mrf.mxu0  ;;  %v5266_v31 = vmax.f32 %v5265_v33, 0.0 }
 0x47e   :  { %v1683_v36 = vadd.f32 %v4454_v34, %v1644_v57  ;;  %v2936_v23 = vadd.f32 %v2935_v56, %v2934_v20  ;;  %3295 = vmatprep.mubr.msk.f32.mxu1 %vm133_vm0, %v1714_v48  ;;  %v5267_v20 = vld [vmem:[#allocation47_spill] sm:$0xff]  ;;  %v5269_v57 = vld [vmem:[#allocation48_spill] sm:$0xff] }
 0x47f   :  { %v2937_v43 = vpop.f32.mrf.mxu0  ;;  %v5268_v48 = vmax.f32 %v5267_v20, 0.0  ;;  %v5270_v56 = vmax.f32 %v5269_v57, 0.0 }
 0x480   :  { %v1715_v22 = vmax.f32 %v1683_v36, 0.0  ;;  %v1645_v45 = vmul.f32 %v2936_v23, %v3788_v35  ;;  %v5271_v36 = vld [vmem:[#allocation49_spill] sm:$0xff] }
 0x481   :  { %v2938_v61 = vpop.f32.mrf.mxu0  ;;  %v5272_v23 = vmax.f32 %v5271_v36, 0.0 }
 0x482   :  { %v1684_v29 = vadd.f32 %v4454_v34, %v1645_v45  ;;  %v2939_v50 = vadd.f32 %v2938_v61, %v2937_v43  ;;  %3296 = vmatmul.mubr.msk.f32.gmra.mxu1 %vm133_vm0, %v1715_v22  ;;  %v5273_v43 = vld [vmem:[#allocation50_spill] sm:$0xff]  ;;  %v5275_v45 = vld [vmem:[#allocation51_spill] sm:$0xff] }
 0x483   :  { %v2940_v18 = vpop.f32.mrf.mxu0  ;;  %v5274_v22 = vmax.f32 %v5273_v43, 0.0  ;;  %v5276_v61 = vmax.f32 %v5275_v45, 0.0 }
 0x484   :  { %v1716_v39 = vmax.f32 %v1684_v29, 0.0  ;;  %v1646_v47 = vmul.f32 %v2939_v50, %v3792_v37  ;;  %v5277_v29 = vld [vmem:[#allocation52_spill] sm:$0xff] }
 0x485   :  { %v2941_v59 = vpop.f32.mrf.mxu0  ;;  %v5278_v50 = vmax.f32 %v5277_v29, 0.0 }
 0x486   :  { %v1685_v4 = vadd.f32 %v4454_v34, %v1646_v47  ;;  %v2942_v41 = vadd.f32 %v2941_v59, %v2940_v18  ;;  %3298 = vmatprep.mubr.msk.f32.mxu1 %vm133_vm0, %v1716_v39  ;;  %v5279_v18 = vld [vmem:[#allocation53_spill] sm:$0xff]  ;;  %v5281_v47 = vld [vmem:[#allocation54_spill] sm:$0xff] }
 0x487   :  { %v2943_v53 = vpop.f32.mrf.mxu0  ;;  %v5280_v39 = vmax.f32 %v5279_v18, 0.0  ;;  %v5282_v59 = vmax.f32 %v5281_v47, 0.0 }
 0x488   :  { %v1717_v52 = vmax.f32 %v1685_v4, 0.0  ;;  %v1647_v35 = vmul.f32 %v2942_v41, %v3778_v25  ;;  %v5283_v4 = vld [vmem:[#allocation3_spill] sm:$0xff] }
 0x489   :  { %v2944_v51 = vpop.f32.mrf.mxu0  ;;  %v5284_v41 = vmax.f32 %v5283_v4, 0.0 }
 0x48a   :  { %v1686_v12 = vadd.f32 %v4454_v34, %v1647_v35  ;;  %v2945_v63 = vadd.f32 %v2944_v51, %v2943_v53  ;;  %3299 = vmatmul.mubr.msk.f32.gmra.mxu1 %vm133_vm0, %v1717_v52  ;;  %v5285_v53 = vld [vmem:[#allocation55_spill] sm:$0xff]  ;;  %v5287_v35 = vld [vmem:[#allocation56_spill] sm:$0xff] }
 0x48b   :  { %v2946_v21 = vpop.f32.mrf.mxu0  ;;  %v5286_v52 = vmax.f32 %v5285_v53, 0.0  ;;  %v5288_v51 = vmax.f32 %v5287_v35, 0.0 }
 0x48c   :  { %v1718_v7 = vmax.f32 %v1686_v12, 0.0  ;;  %v1648_v37 = vmul.f32 %v2945_v63, %v3780_v27  ;;  %v5289_v12 = vld [vmem:[#allocation57_spill] sm:$0xff] }
 0x48d   :  { %v2947_v2 = vpop.f32.mrf.mxu0  ;;  %v5290_v63 = vmax.f32 %v5289_v12, 0.0 }
 0x48e   :  { %v1687_v40 = vadd.f32 %v4454_v34, %v1648_v37  ;;  %v2948_v0 = vadd.f32 %v2947_v2, %v2946_v21  ;;  %3301 = vmatprep.mubr.msk.f32.mxu1 %vm133_vm0, %v1718_v7  ;;  %v5291_v21 = vld [vmem:[#allocation58_spill] sm:$0xff]  ;;  %v5293_v37 = vld [vmem:[#allocation59_spill] sm:$0xff] }
 0x48f   :  { %v2949_v62 = vpop.f32.mrf.mxu0  ;;  %v5292_v7 = vmax.f32 %v5291_v21, 0.0  ;;  %v5294_v2 = vmax.f32 %v5293_v37, 0.0 }
 0x490   :  { %v1719_v60 = vmax.f32 %v1687_v40, 0.0  ;;  %v1649_v25 = vmul.f32 %v2948_v0, %v3760_v15  ;;  %v5295_v40 = vld [vmem:[#allocation60_spill] sm:$0xff] }
 0x491   :  { %v2950_v28 = vpop.f32.mrf.mxu0  ;;  %v5296_v0 = vmax.f32 %v5295_v40, 0.0 }
 0x492   :  { %v1688_v49 = vadd.f32 %v4454_v34, %v1649_v25  ;;  %v2951_v19 = vadd.f32 %v2950_v28, %v2949_v62  ;;  %3302 = vmatmul.mubr.msk.f32.gmra.mxu1 %vm133_vm0, %v1719_v60  ;;  %v5297_v62 = vld [vmem:[#allocation61_spill] sm:$0xff]  ;;  %v5299_v25 = vld [vmem:[#allocation62_spill] sm:$0xff] }
 0x493   :  { %v2952_v38 = vpop.f32.mrf.mxu0  ;;  %v5298_v60 = vmax.f32 %v5297_v62, 0.0  ;;  %v5300_v28 = vmax.f32 %v5299_v25, 0.0 }
 0x494   :  { %v1720_v42 = vmax.f32 %v1688_v49, 0.0  ;;  %v1650_v27 = vmul.f32 %v2951_v19, %v3764_v17  ;;  %v5301_v49 = vld [vmem:[#allocation63_spill] sm:$0xff] }
 0x495   :  { %v2953_v44 = vpop.f32.mrf.mxu0  ;;  %v5302_v19 = vmax.f32 %v5301_v49, 0.0 }
 0x496   :  { %v1689_v5 = vadd.f32 %v4454_v34, %v1650_v27  ;;  %v2954_v11 = vadd.f32 %v2953_v44, %v2952_v38  ;;  %3304 = vmatprep.mubr.msk.f32.mxu1 %vm133_vm0, %v1720_v42  ;;  %v5303_v38 = vld [vmem:[#allocation64_spill] sm:$0xff]  ;;  %v5305_v27 = vld [vmem:[#allocation65_spill] sm:$0xff] }
 0x497   :  { %v2955_v9 = vpop.f32.mrf.mxu0  ;;  %v5304_v42 = vmax.f32 %v5303_v38, 0.0  ;;  %v5306_v44 = vmax.f32 %v5305_v27, 0.0 }
 0x498   :  { %v1721_v58 = vmax.f32 %v1689_v5, 0.0  ;;  %v1651_v15 = vmul.f32 %v2954_v11, %v3742_v6  ;;  %v5257_v6 = vld [vmem:[#allocation42_spill] sm:$0xff] }
 0x499   :  { %v2956_v8 = vpop.f32.mrf.mxu0  ;;  %v5258_v32 = vmax.f32 %v5257_v6, 0.0  ;;  %v5307_v5 = vld [vmem:[#allocation66_spill] sm:$0xff] }
 0x49a   :  { %v1690_v30 = vadd.f32 %v4454_v34, %v1651_v15  ;;  %v2957_v16 = vadd.f32 %v2956_v8, %v2955_v9  ;;  %3305 = vmatmul.mubr.msk.f32.gmra.mxu1 %vm133_vm0, %v1721_v58  ;;  %v5308_v11 = vmax.f32 %v5307_v5, 0.0  ;;  %v5309_v9 = vld [vmem:[#allocation67_spill] sm:$0xff]  ;;  %v5311_v15 = vld [vmem:[#allocation68_spill] sm:$0xff] }
 0x49b   :  { %v5310_v58 = vmax.f32 %v5309_v9, 0.0  ;;  %v5312_v8 = vmax.f32 %v5311_v15, 0.0 }
 0x49c   :  { %v1722_v26 = vmax.f32 %v1690_v30, 0.0  ;;  %v1652_v10 = vmul.f32 %v2957_v16, %v5202_v13  ;;  %v5261_v13 = vld [vmem:[#allocation44_spill] sm:$0xff]  ;;  %v5313_v30 = vld [vmem:[#allocation69_spill] sm:$0xff] }
 0x49d   :  { %v5262_v55 = vmax.f32 %v5261_v13, 0.0  ;;  %v5314_v16 = vmax.f32 %v5313_v30, 0.0 }
 0x49e   :  { %v1691_v17 = vadd.f32 %v4454_v34, %v1652_v10  ;;  %3307 = vmatprep.mubr.msk.f32.mxu1 %vm133_vm0, %v1722_v26  ;;  %v5263_v34 = vld [vmem:[#allocation45_spill] sm:$0xff]  ;;  %v5315_v26 = vld [vmem:[#allocation70_spill] sm:$0xff] }
 0x49f   :  { %v5264_v1 = vmax.f32 %v5263_v34, 0.0  ;;  %v5316_v10 = vmax.f32 %v5315_v26, 0.0 }
 0x4a0   :  { %v1723_v54 = vmax.f32 %v1691_v17, 0.0  ;;  %v5317_v17 = vld [vmem:[#allocation5_spill] sm:$0xff] }
 0x4a2   :  { %3308 = vmatmul.mubr.msk.f32.gmra.mxu1 %vm133_vm0, %v1723_v54  ;;  %v5318_v54 = vmax.f32 %v5317_v17, 0.0 }
 0x4a3   :  { %3318 = vmatprep.mubr.msk.f32.mxu1 %vm133_vm0, %v5256_v14 }
 0x4a6   :  { %3319 = vmatmul.mubr.msk.f32.vlgmr.msra.gmra.mxu1 %vm133_vm0, %v5258_v32 }
 0x4a7   :  { %3321 = vmatprep.mubr.msk.f32.mxu1 %vm133_vm0, %v5260_v46 }
 0x4aa   :  { %3322 = vmatmul.mubr.msk.f32.gmra.mxu1 %vm133_vm0, %v5262_v55 }
 0x4ab   :  { %3324 = vmatprep.mubr.msk.f32.mxu1 %vm133_vm0, %v5264_v1 }
 0x4ae   :  { %3325 = vmatmul.mubr.msk.f32.gmra.mxu1 %vm133_vm0, %v5266_v31 }
 0x4af   :  { %3327 = vmatprep.mubr.msk.f32.mxu1 %vm133_vm0, %v5268_v48 }
 0x4b2   :  { %3328 = vmatmul.mubr.msk.f32.gmra.mxu1 %vm133_vm0, %v5270_v56 }
 0x4b3   :  { %3330 = vmatprep.mubr.msk.f32.mxu1 %vm133_vm0, %v5272_v23 }
 0x4b6   :  { %3331 = vmatmul.mubr.msk.f32.gmra.mxu1 %vm133_vm0, %v5274_v22 }
 0x4b7   :  { %3333 = vmatprep.mubr.msk.f32.mxu1 %vm133_vm0, %v5276_v61 }
 0x4ba   :  { %3334 = vmatmul.mubr.msk.f32.gmra.mxu1 %vm133_vm0, %v5278_v50 }
 0x4bb   :  { %3336 = vmatprep.mubr.msk.f32.mxu1 %vm133_vm0, %v5280_v39 }
 0x4be   :  { %3337 = vmatmul.mubr.msk.f32.gmra.mxu1 %vm133_vm0, %v5282_v59 }
 0x4bf   :  { %3339 = vmatprep.mubr.msk.f32.mxu1 %vm133_vm0, %v5284_v41 }
 0x4c2   :  { %3340 = vmatmul.mubr.msk.f32.gmra.mxu1 %vm133_vm0, %v5286_v52 }
 0x4c3   :  { %3342 = vmatprep.mubr.msk.f32.mxu1 %vm133_vm0, %v5288_v51 }
 0x4c6   :  { %3343 = vmatmul.mubr.msk.f32.gmra.mxu1 %vm133_vm0, %v5290_v63 }
 0x4c7   :  { %3345 = vmatprep.mubr.msk.f32.mxu1 %vm133_vm0, %v5292_v7 }
 0x4ca   :  { %3346 = vmatmul.mubr.msk.f32.gmra.mxu1 %vm133_vm0, %v5294_v2 }
 0x4cb   :  { %3348 = vmatprep.mubr.msk.f32.mxu1 %vm133_vm0, %v5296_v0 }
 0x4ce   :  { %3349 = vmatmul.mubr.msk.f32.gmra.mxu1 %vm133_vm0, %v5298_v60 }
 0x4cf   :  { %3351 = vmatprep.mubr.msk.f32.mxu1 %vm133_vm0, %v5300_v28 }
 0x4d2   :  { %3352 = vmatmul.mubr.msk.f32.gmra.mxu1 %vm133_vm0, %v5302_v19 }
 0x4d3   :  { %3354 = vmatprep.mubr.msk.f32.mxu1 %vm133_vm0, %v5304_v42 }
 0x4d6   :  { %3355 = vmatmul.mubr.msk.f32.gmra.mxu1 %vm133_vm0, %v5306_v44 }
 0x4d7   :  { %3357 = vmatprep.mubr.msk.f32.mxu1 %vm133_vm0, %v5308_v11 }
 0x4da   :  { %3358 = vmatmul.mubr.msk.f32.gmra.mxu1 %vm133_vm0, %v5310_v58 }
 0x4db   :  { %3360 = vmatprep.mubr.msk.f32.mxu1 %vm133_vm0, %v5312_v8 }
 0x4de   :  { %3361 = vmatmul.mubr.msk.f32.gmra.mxu1 %vm133_vm0, %v5314_v16 }
 0x4df   :  { %3363 = vmatprep.mubr.msk.f32.mxu1 %vm133_vm0, %v5316_v10 }
 0x4e2   :  { %3364 = vmatmul.mubr.msk.f32.gmra.mxu1 %vm133_vm0, %v5318_v54 }
 0x4ea   :  { %v3264_v3 = vpop.f32.mrf.mxu1 }
 0x4ec   :  { %v1894_v14 = vpop.f32.mrf.mxu1 }
 0x4f2   :  { %v3267_v6 = vpop.f32.mrf.mxu1 }
 0x4f4   :  { %v1904_v32 = vpop.f32.mrf.mxu1 }
 0x4fa   :  { %v3270_v24 = vpop.f32.mrf.mxu1 }
 0x4fc   :  { %v1914_v46 = vpop.f32.mrf.mxu1 }
 0x502   :  { %v3273_v13 = vpop.f32.mrf.mxu1 }
 0x504   :  { %v1924_v55 = vpop.f32.mrf.mxu1 }
 0x50a   :  { %v4657_v34 = vpop.f32.mrf.mxu1 }
 0x50c   :  { %v4659_v1 = vpop.f32.mrf.mxu1 }
 0x512   :  { %v4661_v33 = vpop.f32.mrf.mxu1 }
 0x514   :  { %v4663_v31 = vpop.f32.mrf.mxu1 }
 0x51a   :  { %v4665_v20 = vpop.f32.mrf.mxu1 }
 0x51c   :  { %v4667_v48 = vpop.f32.mrf.mxu1 }
 0x522   :  { %v4669_v57 = vpop.f32.mrf.mxu1 }
 0x524   :  { %v1964_v56 = vpop.f32.mrf.mxu1 }
 0x52a   :  { %v4671_v36 = vpop.f32.mrf.mxu1 }
 0x52b   :  { %5319 = vst [vmem:[#allocation72_spill] sm:$0xff] %v4671_v36 }
 0x52c   :  { %v4673_v23 = vpop.f32.mrf.mxu1 }
 0x532   :  { %v4675_v43 = vpop.f32.mrf.mxu1 }
 0x534   :  { %v4677_v22 = vpop.f32.mrf.mxu1 }
 0x53a   :  { %v4679_v45 = vpop.f32.mrf.mxu1 }
 0x53c   :  { %v4681_v61 = vpop.f32.mrf.mxu1 }
 0x542   :  { %v4683_v29 = vpop.f32.mrf.mxu1 }
 0x544   :  { %v4685_v50 = vpop.f32.mrf.mxu1 }
 0x54a   :  { %v4687_v18 = vpop.f32.mrf.mxu1 }
 0x54c   :  { %v4689_v39 = vpop.f32.mrf.mxu1 }
 0x552   :  { %v4691_v47 = vpop.f32.mrf.mxu1 }
 0x554   :  { %v2024_v59 = vpop.f32.mrf.mxu1 }
 0x55a   :  { %v3306_v4 = vpop.f32.mrf.mxu1 }
 0x55c   :  { %v2034_v41 = vpop.f32.mrf.mxu1 }
 0x562   :  { %v3309_v53 = vpop.f32.mrf.mxu1 }
 0x564   :  { %v2044_v52 = vpop.f32.mrf.mxu1 }
 0x566   :  { %v3320_v35 = vpop.f32.mrf.mxu1 }
 0x567   :  { %v4693_v12 = vadd.f32 %v3320_v35, %v3264_v3 }
 0x568   :  { %v2119_v51 = vpop.f32.mrf.mxu1 }
 0x569   :  { %5320 = vst [vmem:[#allocation73_spill] sm:$0xff] %v4693_v12  ;;  %v4695_v63 = vadd.f32 %v2119_v51, %v1894_v14 }
 0x56a   :  { %v3323_v21 = vpop.f32.mrf.mxu1 }
 0x56b   :  { %5321 = vst [vmem:[#allocation74_spill] sm:$0xff] %v4695_v63  ;;  %v4699_v2 = vadd.f32 %v3323_v21, %v3267_v6 }
 0x56c   :  { %v2129_v37 = vpop.f32.mrf.mxu1 }
 0x56d   :  { %5322 = vst [vmem:[#allocation8_spill] sm:$0xff] %v4699_v2  ;;  %v4701_v40 = vadd.f32 %v2129_v37, %v1904_v32 }
 0x56e   :  { %v3326_v0 = vpop.f32.mrf.mxu1 }
 0x56f   :  { %5323 = vst [vmem:[#allocation75_spill] sm:$0xff] %v4701_v40  ;;  %v4705_v25 = vadd.f32 %v3326_v0, %v3270_v24 }
 0x570   :  { %v2139_v60 = vpop.f32.mrf.mxu1 }
 0x571   :  { %v4707_v28 = vadd.f32 %v2139_v60, %v1914_v46 }
 0x572   :  { %v3329_v49 = vpop.f32.mrf.mxu1 }
 0x573   :  { %v4711_v42 = vadd.f32 %v3329_v49, %v3273_v13 }
 0x574   :  { %v2149_v38 = vpop.f32.mrf.mxu1 }
 0x575   :  { %v4713_v27 = vadd.f32 %v2149_v38, %v1924_v55 }
 0x576   :  { %v3332_v44 = vpop.f32.mrf.mxu1 }
 0x578   :  { %v2159_v11 = vpop.f32.mrf.mxu1 }
 0x57a   :  { %v3335_v9 = vpop.f32.mrf.mxu1 }
 0x57c   :  { %v2169_v58 = vpop.f32.mrf.mxu1 }
 0x57e   :  { %v3338_v15 = vpop.f32.mrf.mxu1 }
 0x57f   :  { %v2185_v2 = vadd.f32 %v3338_v15, %v4665_v20  ;;  %v3426_v15 = vld [vmem:[%s5008_s0 + $0x40] ss:$8 sps:$4 sm:$0xff]  }
 0x580   :  { %v2179_v8 = vpop.f32.mrf.mxu1 }
 0x581   :  { %v2180_v5 = vadd.f32 %v2179_v8, %v4667_v48  ;;  %v3427_v8 = vld [vmem:[%s5008_s0 + $0x54] ss:$8 sps:$4 sm:$0xff]  }
 0x582   :  { %v3341_v30 = vpop.f32.mrf.mxu1 }
 0x583   :  { %v2195_v7 = vadd.f32 %v3341_v30, %v4669_v57  ;;  %v3428_v30 = vld [vmem:[%s5008_s0 + $0x50] ss:$8 sps:$4 sm:$0xff]  }
 0x584   :  { %v2189_v16 = vpop.f32.mrf.mxu1 }
 0x585   :  { %v2190_v37 = vadd.f32 %v2189_v16, %v1964_v56  ;;  %v2170_v56 = vadd.f32 %v2169_v58, %v4663_v31  ;;  %v3425_v58 = vld [vmem:[%s5008_s0 + $0x44] ss:$8 sps:$4 sm:$0xff]  }
 0x586   :  { %v3344_v26 = vpop.f32.mrf.mxu1  ;;  %v3429_v16 = vld [vmem:[%s5008_s0 + $0x64] ss:$8 sps:$4 sm:$0xff]  }
 0x587   :  { %v2285_v63 = vpack.c.bf16 %v2195_v7, %v2190_v37  ;;  %v3445_v37 = vld [vmem:[%s5008_s0 + $0xe4] ss:$8 sps:$4 sm:$0xff]  }
 0x588   :  { %v2199_v10 = vpop.f32.mrf.mxu1 }
 0x58a   :  { %v3347_v17 = vpop.f32.mrf.mxu1 }
 0x58c   :  { %v2209_v54 = vpop.f32.mrf.mxu1 }
 0x58e   :  { %v3350_v3 = vpop.f32.mrf.mxu1 }
 0x590   :  { %v2219_v14 = vpop.f32.mrf.mxu1 }
 0x592   :  { %v3353_v6 = vpop.f32.mrf.mxu1 }
 0x593   :  { %v2235_v31 = vadd.f32 %v3353_v6, %v4683_v29  ;;  %v2200_v29 = vadd.f32 %v2199_v10, %v4673_v23  ;;  %v3418_v23 = vld [vmem:[%s5008_s0] ss:$8 sps:$4 sm:$0xff]   ;;  %v3431_v10 = vld [vmem:[%s5008_s0 + $0x74] ss:$8 sps:$4 sm:$0xff]   ;;  %v3436_v6 = vld [vmem:[%s5008_s0 + $0x90] ss:$8 sps:$4 sm:$0xff]  }
 0x594   :  { %v2229_v32 = vpop.f32.mrf.mxu1 }
 0x595   :  { %v2230_v20 = vadd.f32 %v2229_v32, %v4685_v50  ;;  %v5324_v50 = vpack.c.bf16 %v4711_v42, %v4713_v27  ;;  %v5330_v42 = vld [vmem:[#allocation73_spill] sm:$0xff]  ;;  %v5331_v27 = vld [vmem:[#allocation74_spill] sm:$0xff] }
 0x596   :  { %v3356_v24 = vpop.f32.mrf.mxu1  ;;  %v3437_v32 = vld [vmem:[%s5008_s0 + $0xa4] ss:$8 sps:$4 sm:$0xff]  }
 0x597   :  { %v2245_v48 = vadd.f32 %v3356_v24, %v4687_v18  ;;  %v2225_v18 = vadd.f32 %v3350_v3, %v4679_v45  ;;  %v3434_v3 = vld [vmem:[%s5008_s0 + $0x80] ss:$8 sps:$4 sm:$0xff]  }
 0x598   :  { %v2239_v46 = vpop.f32.mrf.mxu1  ;;  %v3438_v24 = vld [vmem:[%s5008_s0 + $0xa0] ss:$8 sps:$4 sm:$0xff]  }
 0x59a   :  { %v3359_v13 = vpop.f32.mrf.mxu1 }
 0x59b   :  { %v2255_v36 = vadd.f32 %v3359_v13, %v4691_v47  ;;  %v2165_v47 = vadd.f32 %v3332_v44, %v4657_v34  ;;  %v2215_v34 = vadd.f32 %v3347_v17, %v4675_v43  ;;  %v5332_v43 = vpack.c.bf16 %v5330_v42, %v5331_v27  ;;  %v3421_v44 = vld [vmem:[%s5008_s0 + $0x24] ss:$8 sps:$4 sm:$0xff]   ;;  %v3432_v17 = vld [vmem:[%s5008_s0 + $0x70] ss:$8 sps:$4 sm:$0xff]  }
 0x59c   :  { %v2249_v55 = vpop.f32.mrf.mxu1  ;;  %v3440_v13 = vld [vmem:[%s5008_s0 + $0xb0] ss:$8 sps:$4 sm:$0xff]  }
 0x59d   :  { %v2250_v12 = vadd.f32 %v2249_v55, %v2024_v59  ;;  %v2160_v59 = vadd.f32 %v2159_v11, %v4659_v1  ;;  %v2210_v1 = vadd.f32 %v2209_v54, %v4677_v22  ;;  %v5327_v22 = vld [vmem:[#allocation8_spill] sm:$0xff]  ;;  %v3433_v54 = vld [vmem:[%s5008_s0 + $0x84] ss:$8 sps:$4 sm:$0xff]  }
 0x59e   :  { %v3362_v35 = vpop.f32.mrf.mxu1  ;;  %v3423_v11 = vld [vmem:[%s5008_s0 + $0x34] ss:$8 sps:$4 sm:$0xff]   ;;  %v3441_v55 = vld [vmem:[%s5008_s0 + $0xc4] ss:$8 sps:$4 sm:$0xff]  }
 0x59f   :  { %v2265_v62 = vadd.f32 %v3362_v35, %v3306_v4  ;;  %v2291_v57 = vpack.c.bf16 %v2255_v36, %v2250_v12  ;;  %v2175_v4 = vadd.f32 %v3335_v9, %v4661_v33  ;;  %v2220_v36 = vadd.f32 %v2219_v14, %v4681_v61  ;;  %v3424_v9 = vld [vmem:[%s5008_s0 + $0x30] ss:$8 sps:$4 sm:$0xff]   ;;  %v3435_v14 = vld [vmem:[%s5008_s0 + $0x94] ss:$8 sps:$4 sm:$0xff]   ;;  %v3442_v35 = vld [vmem:[%s5008_s0 + $0xc0] ss:$8 sps:$4 sm:$0xff]  }
 0x5a0   :  { %v2259_v51 = vpop.f32.mrf.mxu1  ;;  %v2289_v33 = vpack.c.bf16 %v2235_v31, %v2230_v20  ;;  %v2287_v7 = vpack.c.bf16 %v2215_v34, %v2210_v1  ;;  %v5325_v61 = vpack.c.bf16 %v4705_v25, %v4707_v28  ;;  %v3419_v25 = vld [vmem:[%s5008_s0 + $0x14] ss:$8 sps:$4 sm:$0xff]   ;;  %v3420_v28 = vld [vmem:[%s5008_s0 + $0x10] ss:$8 sps:$4 sm:$0xff]  }
 0x5a1   :  { %v2260_v60 = vadd.f32 %v2259_v51, %v2034_v41  ;;  %v2284_v41 = vpack.c.bf16 %v2185_v2, %v2180_v5  ;;  %v2288_v12 = vpack.c.bf16 %v2225_v18, %v2220_v36  ;;  %v5326_v2 = vld [vmem:[#allocation72_spill] sm:$0xff]  ;;  %v3422_v5 = vld [vmem:[%s5008_s0 + $0x20] ss:$8 sps:$4 sm:$0xff]  }
 0x5a2   :  { %v3365_v21 = vpop.f32.mrf.mxu1  ;;  %v2205_v45 = vadd.f32 %v3344_v26, %v5326_v2  ;;  %v3430_v26 = vld [vmem:[%s5008_s0 + $0x60] ss:$8 sps:$4 sm:$0xff]   ;;  %v3443_v51 = vld [vmem:[%s5008_s0 + $0xd4] ss:$8 sps:$4 sm:$0xff]  }
 0x5a3   :  { %v2275_v49 = vadd.f32 %v3365_v21, %v3309_v53  ;;  %v2292_v40 = vpack.c.bf16 %v2265_v62, %v2260_v60  ;;  %v2240_v53 = vadd.f32 %v2239_v46, %v4689_v39  ;;  %v2282_v39 = vpack.c.bf16 %v2165_v47, %v2160_v59  ;;  %v5328_v62 = vld [vmem:[#allocation75_spill] sm:$0xff]  ;;  %v3439_v46 = vld [vmem:[%s5008_s0 + $0xb4] ss:$8 sps:$4 sm:$0xff]   ;;  %v3444_v21 = vld [vmem:[%s5008_s0 + $0xd0] ss:$8 sps:$4 sm:$0xff]  }
 0x5a4   :  { %v2269_v0 = vpop.f32.mrf.mxu1  ;;  %v3447_v60 = vld [vmem:[%s5008_s0 + $0xf4] ss:$8 sps:$4 sm:$0xff]  }
 0x5a5   :  { %v2270_v38 = vadd.f32 %v2269_v0, %v2044_v52  ;;  %v2283_v52 = vpack.c.bf16 %v2175_v4, %v2170_v56  ;;  %v3446_v0 = vld [vmem:[%s5008_s0 + $0xe0] ss:$8 sps:$4 sm:$0xff]  }
 0x5a6   :  { %v4843_v56 = vld [vmem:[%s5013_s8] ss:$0 sm:$0xff] }
 0x5a7   :  { %v2293_v19 = vpack.c.bf16 %v2275_v49, %v2270_v38  ;;  %v3448_v49 = vld [vmem:[%s5008_s0 + $0xf0] ss:$8 sps:$4 sm:$0xff]  }
 0x5a9   :  { %3030 = vmatprep.subr.bf16.mxu0 %v2293_v19  ;;  %v5329_v19 = vpack.c.bf16 %v5327_v22, %v5328_v62 }
 0x5aa   :  { %3031 = vmatpush3.bf16.msra.mxu0 %v2285_v63  ;;  %v2290_v63 = vpack.c.bf16 %v2245_v48, %v2240_v53 }
 0x5ab   :  { %3032 = vmatprep.subr.bf16.mxu0 %v2292_v40  ;;  %v2286_v40 = vpack.c.bf16 %v2205_v45, %v2200_v29 }
 0x5ae   :  { %3033 = vmatpush3.bf16.msra.mxu0 %v2284_v41 }
 0x5af   :  { %3034 = vmatprep.subr.bf16.mxu0 %v2291_v57 }
 0x5b2   :  { %3035 = vmatpush3.bf16.msra.mxu0 %v2283_v52 }
 0x5b3   :  { %3036 = vmatprep.subr.bf16.mxu0 %v2290_v63 }
 0x5b6   :  { %3037 = vmatpush3.bf16.msra.mxu0 %v2282_v39 }
 0x5b7   :  { %3038 = vmatprep.subr.bf16.mxu0 %v2289_v33 }
 0x5ba   :  { %3039 = vmatpush3.bf16.msra.mxu0 %v5324_v50 }
 0x5bb   :  { %3040 = vmatprep.subr.bf16.mxu0 %v2288_v12 }
 0x5be   :  { %3041 = vmatpush3.bf16.msra.mxu0 %v5325_v61 }
 0x5bf   :  { %3042 = vmatprep.subr.bf16.mxu0 %v2287_v7 }
 0x5c2   :  { %3043 = vmatpush3.bf16.msra.mxu0 %v5329_v19 }
 0x5c3   :  { %3044 = vmatprep.subr.bf16.mxu0 %v2286_v40 }
 0x5c6   :  { %3045 = vmatpush3.bf16.msra.mxu0 %v5332_v43 }
 0x5c9   :  { %2334 = vmatmul.mubr.bf16.vlgmr.msra.gmra.mxu0 %v3418_v23 }
 0x5ca   :  { %2341 = vmatprep.mubr.bf16.mxu0 %v3419_v25 }
 0x5d1   :  { %2342 = vmatmul.mubr.bf16.gmra.mxu0 %v3420_v28 }
 0x5d2   :  { %2349 = vmatprep.mubr.bf16.mxu0 %v3421_v44 }
 0x5d9   :  { %2350 = vmatmul.mubr.bf16.gmra.mxu0 %v3422_v5 }
 0x5da   :  { %2357 = vmatprep.mubr.bf16.mxu0 %v3423_v11 }
 0x5e1   :  { %2358 = vmatmul.mubr.bf16.gmra.mxu0 %v3424_v9 }
 0x5e2   :  { %2365 = vmatprep.mubr.bf16.mxu0 %v3425_v58 }
 0x5e9   :  { %2366 = vmatmul.mubr.bf16.gmra.mxu0 %v3426_v15 }
 0x5ea   :  { %2373 = vmatprep.mubr.bf16.mxu0 %v3427_v8 }
 0x5f1   :  { %2374 = vmatmul.mubr.bf16.gmra.mxu0 %v3428_v30 }
 0x5f2   :  { %2381 = vmatprep.mubr.bf16.mxu0 %v3429_v16 }
 0x5f9   :  { %2382 = vmatmul.mubr.bf16.gmra.mxu0 %v3430_v26 }
 0x5fa   :  { %2389 = vmatprep.mubr.bf16.mxu0 %v3431_v10 }
 0x601   :  { %2390 = vmatmul.mubr.bf16.gmra.mxu0 %v3432_v17 }
 0x602   :  { %2397 = vmatprep.mubr.bf16.mxu0 %v3433_v54 }
 0x609   :  { %2398 = vmatmul.mubr.bf16.gmra.mxu0 %v3434_v3 }
 0x60a   :  { %2405 = vmatprep.mubr.bf16.mxu0 %v3435_v14 }
 0x611   :  { %2406 = vmatmul.mubr.bf16.gmra.mxu0 %v3436_v6 }
 0x612   :  { %2413 = vmatprep.mubr.bf16.mxu0 %v3437_v32 }
 0x619   :  { %2414 = vmatmul.mubr.bf16.gmra.mxu0 %v3438_v24 }
 0x61a   :  { %2421 = vmatprep.mubr.bf16.mxu0 %v3439_v46 }
 0x621   :  { %2422 = vmatmul.mubr.bf16.gmra.mxu0 %v3440_v13 }
 0x622   :  { %2429 = vmatprep.mubr.bf16.mxu0 %v3441_v55 }
 0x629   :  { %2430 = vmatmul.mubr.bf16.gmra.mxu0 %v3442_v35 }
 0x62a   :  { %2437 = vmatprep.mubr.bf16.mxu0 %v3443_v51 }
 0x631   :  { %2438 = vmatmul.mubr.bf16.gmra.mxu0 %v3444_v21 }
 0x632   :  { %2445 = vmatprep.mubr.bf16.mxu0 %v3445_v37 }
 0x639   :  { %2446 = vmatmul.mubr.bf16.gmra.mxu0 %v3446_v0 }
 0x63a   :  { %2453 = vmatprep.mubr.bf16.mxu0 %v3447_v60 }
 0x641   :  { %2454 = vmatmul.mubr.bf16.gmra.mxu0 %v3448_v49 }
 0x689   :  { %v3046_v38 = vpop.f32.mrf.mxu0 }
 0x68b   :  { %v3047_v41 = vpop.f32.mrf.mxu0 }
 0x68c   :  { %v3048_v53 = vadd.f32 %v3047_v41, %v3046_v38 }
 0x68d   :  { %v3049_v57 = vpop.f32.mrf.mxu0 }
 0x68e   :  { %v2336_v4 = vadd.f32 %v3048_v53, %v4843_v56 }
 0x68f   :  { %v3050_v48 = vpop.f32.mrf.mxu0 }
 0x690   :  { %2463 = vst.msk [vmem:[%s5014_s9] sm:$0xff] %vm2462_vm1, %v2336_v4  ;;  %v3051_v59 = vadd.f32 %v3050_v48, %v3049_v57 }
 0x691   :  { %v3052_v52 = vpop.f32.mrf.mxu0 }
 0x692   :  { %v2339_v20 = vadd.f32 %v3051_v59, %v4843_v56 }
 0x693   :  { %v3053_v63 = vpop.f32.mrf.mxu0 }
 0x694   :  { %2464 = vst.msk [vmem:[%s5014_s9 + $0x8] sm:$0xff] %vm2462_vm1, %v2339_v20  ;;  %v3054_v47 = vadd.f32 %v3053_v63, %v3052_v52 }
 0x695   :  { %v3055_v31 = vpop.f32.mrf.mxu0 }
 0x696   :  { %v2344_v39 = vadd.f32 %v3054_v47, %v4843_v56 }
 0x697   :  { %v3056_v36 = vpop.f32.mrf.mxu0 }
 0x698   :  { %2465 = vst.msk [vmem:[%s5014_s9 + $0x10] sm:$0xff] %vm2462_vm1, %v2344_v39  ;;  %v3057_v33 = vadd.f32 %v3056_v36, %v3055_v31 }
 0x699   :  { %v3058_v18 = vpop.f32.mrf.mxu0 }
 0x69a   :  { %v2347_v1 = vadd.f32 %v3057_v33, %v4843_v56 }
 0x69b   :  { %v3059_v12 = vpop.f32.mrf.mxu0 }
 0x69c   :  { %2466 = vst.msk [vmem:[%s5014_s9 + $0x18] sm:$0xff] %vm2462_vm1, %v2347_v1  ;;  %v3060_v50 = vadd.f32 %v3059_v12, %v3058_v18 }
 0x69d   :  { %v3061_v34 = vpop.f32.mrf.mxu0 }
 0x69e   :  { %v2352_v29 = vadd.f32 %v3060_v50, %v4843_v56 }
 0x69f   :  { %v3062_v7 = vpop.f32.mrf.mxu0 }
 0x6a0   :  { %2467 = vst.msk [vmem:[%s5014_s9 + $0x20] sm:$0xff] %vm2462_vm1, %v2352_v29  ;;  %v3063_v61 = vadd.f32 %v3062_v7, %v3061_v34 }
 0x6a1   :  { %v3064_v2 = vpop.f32.mrf.mxu0 }
 0x6a2   :  { %v2355_v45 = vadd.f32 %v3063_v61, %v4843_v56 }
 0x6a3   :  { %v3065_v40 = vpop.f32.mrf.mxu0 }
 0x6a4   :  { %2468 = vst.msk [vmem:[%s5014_s9 + $0x28] sm:$0xff] %vm2462_vm1, %v2355_v45  ;;  %v3066_v22 = vadd.f32 %v3065_v40, %v3064_v2 }
 0x6a5   :  { %v3067_v62 = vpop.f32.mrf.mxu0 }
 0x6a6   :  { %v2360_v19 = vadd.f32 %v3066_v22, %v4843_v56 }
 0x6a7   :  { %v3068_v42 = vpop.f32.mrf.mxu0 }
 0x6a8   :  { %2469 = vst.msk [vmem:[%s5014_s9 + $0x30] sm:$0xff] %vm2462_vm1, %v2360_v19  ;;  %v3069_v27 = vadd.f32 %v3068_v42, %v3067_v62 }
 0x6a9   :  { %v3070_v43 = vpop.f32.mrf.mxu0 }
 0x6aa   :  { %v2363_v23 = vadd.f32 %v3069_v27, %v4843_v56 }
 0x6ab   :  { %v3071_v25 = vpop.f32.mrf.mxu0 }
 0x6ac   :  { %2470 = vst.msk [vmem:[%s5014_s9 + $0x38] sm:$0xff] %vm2462_vm1, %v2363_v23  ;;  %v3072_v28 = vadd.f32 %v3071_v25, %v3070_v43 }
 0x6ad   :  { %v3073_v44 = vpop.f32.mrf.mxu0 }
 0x6ae   :  { %v2368_v5 = vadd.f32 %v3072_v28, %v4843_v56 }
 0x6af   :  { %v3074_v11 = vpop.f32.mrf.mxu0 }
 0x6b0   :  { %2471 = vst.msk [vmem:[%s5014_s9 + $0x40] sm:$0xff] %vm2462_vm1, %v2368_v5  ;;  %v3075_v9 = vadd.f32 %v3074_v11, %v3073_v44 }
 0x6b1   :  { %v3076_v58 = vpop.f32.mrf.mxu0 }
 0x6b2   :  { %v2371_v15 = vadd.f32 %v3075_v9, %v4843_v56 }
 0x6b3   :  { %v3077_v8 = vpop.f32.mrf.mxu0 }
 0x6b4   :  { %2472 = vst.msk [vmem:[%s5014_s9 + $0x48] sm:$0xff] %vm2462_vm1, %v2371_v15  ;;  %v3078_v30 = vadd.f32 %v3077_v8, %v3076_v58 }
 0x6b5   :  { %v3079_v16 = vpop.f32.mrf.mxu0 }
 0x6b6   :  { %v2376_v26 = vadd.f32 %v3078_v30, %v4843_v56 }
 0x6b7   :  { %v3080_v10 = vpop.f32.mrf.mxu0 }
 0x6b8   :  { %2473 = vst.msk [vmem:[%s5014_s9 + $0x50] sm:$0xff] %vm2462_vm1, %v2376_v26  ;;  %v3081_v17 = vadd.f32 %v3080_v10, %v3079_v16 }
 0x6b9   :  { %v3082_v54 = vpop.f32.mrf.mxu0 }
 0x6ba   :  { %v2379_v3 = vadd.f32 %v3081_v17, %v4843_v56 }
 0x6bb   :  { %v3083_v14 = vpop.f32.mrf.mxu0 }
 0x6bc   :  { %2474 = vst.msk [vmem:[%s5014_s9 + $0x58] sm:$0xff] %vm2462_vm1, %v2379_v3  ;;  %v3084_v6 = vadd.f32 %v3083_v14, %v3082_v54 }
 0x6bd   :  { %v3085_v32 = vpop.f32.mrf.mxu0 }
 0x6be   :  { %v2384_v24 = vadd.f32 %v3084_v6, %v4843_v56 }
 0x6bf   :  { %v3086_v46 = vpop.f32.mrf.mxu0 }
 0x6c0   :  { %2475 = vst.msk [vmem:[%s5014_s9 + $0x60] sm:$0xff] %vm2462_vm1, %v2384_v24  ;;  %v3087_v13 = vadd.f32 %v3086_v46, %v3085_v32 }
 0x6c1   :  { %v3088_v55 = vpop.f32.mrf.mxu0 }
 0x6c2   :  { %v2387_v35 = vadd.f32 %v3087_v13, %v4843_v56 }
 0x6c3   :  { %v3089_v51 = vpop.f32.mrf.mxu0 }
 0x6c4   :  { %2476 = vst.msk [vmem:[%s5014_s9 + $0x68] sm:$0xff] %vm2462_vm1, %v2387_v35  ;;  %v3090_v21 = vadd.f32 %v3089_v51, %v3088_v55 }
 0x6c5   :  { %v3091_v37 = vpop.f32.mrf.mxu0 }
 0x6c6   :  { %v2392_v0 = vadd.f32 %v3090_v21, %v4843_v56 }
 0x6c7   :  { %v3092_v60 = vpop.f32.mrf.mxu0 }
 0x6c8   :  { %2477 = vst.msk [vmem:[%s5014_s9 + $0x70] sm:$0xff] %vm2462_vm1, %v2392_v0  ;;  %v3093_v49 = vadd.f32 %v3092_v60, %v3091_v37 }
 0x6c9   :  { %v3094_v38 = vpop.f32.mrf.mxu0 }
 0x6ca   :  { %v2395_v41 = vadd.f32 %v3093_v49, %v4843_v56 }
 0x6cb   :  { %v3095_v53 = vpop.f32.mrf.mxu0 }
 0x6cc   :  { %2478 = vst.msk [vmem:[%s5014_s9 + $0x78] sm:$0xff] %vm2462_vm1, %v2395_v41  ;;  %v3096_v57 = vadd.f32 %v3095_v53, %v3094_v38 }
 0x6cd   :  { %v3097_v4 = vpop.f32.mrf.mxu0 }
 0x6ce   :  { %v2400_v48 = vadd.f32 %v3096_v57, %v4843_v56 }
 0x6cf   :  { %v3098_v59 = vpop.f32.mrf.mxu0 }
 0x6d0   :  { %2479 = vst.msk [vmem:[%s5014_s9 + $0x80] sm:$0xff] %vm2462_vm1, %v2400_v48  ;;  %v3099_v52 = vadd.f32 %v3098_v59, %v3097_v4 }
 0x6d1   :  { %v3100_v20 = vpop.f32.mrf.mxu0 }
 0x6d2   :  { %v2403_v63 = vadd.f32 %v3099_v52, %v4843_v56 }
 0x6d3   :  { %v3101_v47 = vpop.f32.mrf.mxu0 }
 0x6d4   :  { %2480 = vst.msk [vmem:[%s5014_s9 + $0x88] sm:$0xff] %vm2462_vm1, %v2403_v63  ;;  %v3102_v31 = vadd.f32 %v3101_v47, %v3100_v20 }
 0x6d5   :  { %v3103_v39 = vpop.f32.mrf.mxu0 }
 0x6d6   :  { %v2408_v36 = vadd.f32 %v3102_v31, %v4843_v56 }
 0x6d7   :  { %v3104_v33 = vpop.f32.mrf.mxu0 }
 0x6d8   :  { %2481 = vst.msk [vmem:[%s5014_s9 + $0x90] sm:$0xff] %vm2462_vm1, %v2408_v36  ;;  %v3105_v18 = vadd.f32 %v3104_v33, %v3103_v39 }
 0x6d9   :  { %v3106_v1 = vpop.f32.mrf.mxu0 }
 0x6da   :  { %v2411_v12 = vadd.f32 %v3105_v18, %v4843_v56 }
 0x6db   :  { %v3107_v50 = vpop.f32.mrf.mxu0 }
 0x6dc   :  { %2482 = vst.msk [vmem:[%s5014_s9 + $0x98] sm:$0xff] %vm2462_vm1, %v2411_v12  ;;  %v3108_v34 = vadd.f32 %v3107_v50, %v3106_v1 }
 0x6dd   :  { %v3109_v29 = vpop.f32.mrf.mxu0 }
 0x6de   :  { %v2416_v7 = vadd.f32 %v3108_v34, %v4843_v56 }
 0x6df   :  { %v3110_v61 = vpop.f32.mrf.mxu0 }
 0x6e0   :  { %2483 = vst.msk [vmem:[%s5014_s9 + $0xa0] sm:$0xff] %vm2462_vm1, %v2416_v7  ;;  %v3111_v2 = vadd.f32 %v3110_v61, %v3109_v29 }
 0x6e1   :  { %v3112_v45 = vpop.f32.mrf.mxu0 }
 0x6e2   :  { %v2419_v40 = vadd.f32 %v3111_v2, %v4843_v56 }
 0x6e3   :  { %v3113_v22 = vpop.f32.mrf.mxu0 }
 0x6e4   :  { %2484 = vst.msk [vmem:[%s5014_s9 + $0xa8] sm:$0xff] %vm2462_vm1, %v2419_v40  ;;  %v3114_v62 = vadd.f32 %v3113_v22, %v3112_v45 }
 0x6e5   :  { %v3115_v19 = vpop.f32.mrf.mxu0 }
 0x6e6   :  { %v2424_v42 = vadd.f32 %v3114_v62, %v4843_v56 }
 0x6e7   :  { %v3116_v27 = vpop.f32.mrf.mxu0 }
 0x6e8   :  { %2485 = vst.msk [vmem:[%s5014_s9 + $0xb0] sm:$0xff] %vm2462_vm1, %v2424_v42  ;;  %v3117_v43 = vadd.f32 %v3116_v27, %v3115_v19 }
 0x6e9   :  { %v3118_v23 = vpop.f32.mrf.mxu0 }
 0x6ea   :  { %v2427_v25 = vadd.f32 %v3117_v43, %v4843_v56 }
 0x6eb   :  { %v3119_v28 = vpop.f32.mrf.mxu0 }
 0x6ec   :  { %2486 = vst.msk [vmem:[%s5014_s9 + $0xb8] sm:$0xff] %vm2462_vm1, %v2427_v25  ;;  %v3120_v44 = vadd.f32 %v3119_v28, %v3118_v23 }
 0x6ed   :  { %v3121_v5 = vpop.f32.mrf.mxu0 }
 0x6ee   :  { %v2432_v11 = vadd.f32 %v3120_v44, %v4843_v56 }
 0x6ef   :  { %v3122_v9 = vpop.f32.mrf.mxu0 }
 0x6f0   :  { %2487 = vst.msk [vmem:[%s5014_s9 + $0xc0] sm:$0xff] %vm2462_vm1, %v2432_v11  ;;  %v3123_v58 = vadd.f32 %v3122_v9, %v3121_v5 }
 0x6f1   :  { %v3124_v15 = vpop.f32.mrf.mxu0 }
 0x6f2   :  { %v2435_v8 = vadd.f32 %v3123_v58, %v4843_v56 }
 0x6f3   :  { %v3125_v30 = vpop.f32.mrf.mxu0 }
 0x6f4   :  { %2488 = vst.msk [vmem:[%s5014_s9 + $0xc8] sm:$0xff] %vm2462_vm1, %v2435_v8  ;;  %v3126_v16 = vadd.f32 %v3125_v30, %v3124_v15 }
 0x6f5   :  { %v3127_v26 = vpop.f32.mrf.mxu0 }
 0x6f6   :  { %v2440_v10 = vadd.f32 %v3126_v16, %v4843_v56 }
 0x6f7   :  { %v3128_v17 = vpop.f32.mrf.mxu0 }
 0x6f8   :  { %2489 = vst.msk [vmem:[%s5014_s9 + $0xd0] sm:$0xff] %vm2462_vm1, %v2440_v10  ;;  %v3129_v54 = vadd.f32 %v3128_v17, %v3127_v26 }
 0x6f9   :  { %v3130_v3 = vpop.f32.mrf.mxu0 }
 0x6fa   :  { %v2443_v14 = vadd.f32 %v3129_v54, %v4843_v56 }
 0x6fb   :  { %v3131_v6 = vpop.f32.mrf.mxu0 }
 0x6fc   :  { %2490 = vst.msk [vmem:[%s5014_s9 + $0xd8] sm:$0xff] %vm2462_vm1, %v2443_v14  ;;  %v3132_v32 = vadd.f32 %v3131_v6, %v3130_v3 }
 0x6fd   :  { %v3133_v24 = vpop.f32.mrf.mxu0 }
 0x6fe   :  { %v2448_v46 = vadd.f32 %v3132_v32, %v4843_v56 }
 0x6ff   :  { %v3134_v13 = vpop.f32.mrf.mxu0 }
 0x700   :  { %2491 = vst.msk [vmem:[%s5014_s9 + $0xe0] sm:$0xff] %vm2462_vm1, %v2448_v46  ;;  %v3135_v55 = vadd.f32 %v3134_v13, %v3133_v24 }
 0x701   :  { %v3136_v35 = vpop.f32.mrf.mxu0 }
 0x702   :  { %v2451_v51 = vadd.f32 %v3135_v55, %v4843_v56 }
 0x703   :  { %v3137_v21 = vpop.f32.mrf.mxu0 }
 0x704   :  { %2492 = vst.msk [vmem:[%s5014_s9 + $0xe8] sm:$0xff] %vm2462_vm1, %v2451_v51  ;;  %v3138_v37 = vadd.f32 %v3137_v21, %v3136_v35 }
 0x705   :  { %v3139_v0 = vpop.f32.mrf.mxu0 }
 0x706   :  { %v2456_v60 = vadd.f32 %v3138_v37, %v4843_v56 }
 0x707   :  { %v3140_v49 = vpop.f32.mrf.mxu0 }
 0x708   :  { %2493 = vst.msk [vmem:[%s5014_s9 + $0xf0] sm:$0xff] %vm2462_vm1, %v2456_v60  ;;  %v3141_v38 = vadd.f32 %v3140_v49, %v3139_v0 }
 0x70a   :  { %v2459_v41 = vadd.f32 %v3141_v38, %v4843_v56 }
 0x70c   :  { %2494 = vst.msk [vmem:[%s5014_s9 + $0xf8] sm:$0xff] %vm2462_vm1, %v2459_v41 }

</bundles_post_ra>
